<compile_context>
chip_gen: v5e
topology: v5e:2x2
jax: 0.10.0
libtpu: 0.0.40
codegen_flags: <defaults>
</compile_context>

<pallas_src>
import functools

import jax
import jax.numpy as jnp
from jax import lax
from jax.experimental import pallas as pl
from jax.experimental.pallas import tpu as pltpu


def _fusion_kernel(x_ref, y_ref, wxt_ref, wyt_ref, bconv_ref, w1t_ref, w2t_ref,
                   pooled_ref, sum_sc, max_sc, *, inv_hw, hw, tile_hw, acc_w,
                   needs_mask):
    s = pl.program_id(1)

    @pl.when(s == 0)
    def _():
        sum_sc[...] = jnp.zeros_like(sum_sc)
        max_sc[...] = jnp.full_like(max_sc, -jnp.inf)

    # Folded Conv1x1 + BN + ReLU on a (Cout, tile_hw) tile.
    # cat(x, y) conv == Wx @ x + Wy @ y ; activations cast to bf16 in-register,
    # f32 accumulation on the MXU.
    xb = x_ref[...].astype(wxt_ref.dtype)          # (Cin, tile_hw)
    yb = y_ref[...].astype(wyt_ref.dtype)
    h = jnp.dot(wxt_ref[...], xb, preferred_element_type=jnp.float32)
    h = h + jnp.dot(wyt_ref[...], yb, preferred_element_type=jnp.float32)
    h = jnp.maximum(h + bconv_ref[...], 0.0)       # (Cout, tile_hw)

    if needs_mask:
        # Last tile may run past HW; kill the out-of-range lanes.
        lane = lax.broadcasted_iota(jnp.int32, (1, tile_hw), 1)
        valid = (s * tile_hw + lane) < hw
        h_s = jnp.where(valid, h, 0.0)
        h_m = jnp.where(valid, h, -jnp.inf)
    else:
        h_s, h_m = h, h

    # Lane-wide accumulation: pure VPU adds/maxes on (Cout, acc_w) chunks;
    # the cross-lane collapse is deferred to the epilogue (runs once per batch).
    n_chunks = tile_hw // acc_w
    for c in range(n_chunks):
        lo = c * acc_w
        sum_sc[...] = sum_sc[...] + h_s[:, lo:lo + acc_w]
        max_sc[...] = jnp.maximum(max_sc[...], h_m[:, lo:lo + acc_w])

    @pl.when(s == pl.num_programs(1) - 1)
    def _():
        # Only spatial statistics of h are needed downstream:
        #   mean(h * (1 + ca)) over HW == mean(h) * (1 + ca)  (ca const over HW)
        sum_col = jnp.sum(sum_sc[...], axis=1, keepdims=True)   # (Cout, 1)
        max_col = jnp.max(max_sc[...], axis=1, keepdims=True)   # (Cout, 1)
        avg_col = sum_col * inv_hw

        # ChannelAttention: shared MLP applied once to stacked [avg | max]
        # columns, weights in native PyTorch (out, in) layout.
        stacked = jnp.concatenate([avg_col, max_col], axis=1)   # (Cout, 2)
        a = jnp.maximum(
            jnp.dot(w1t_ref[...], stacked, preferred_element_type=jnp.float32),
            0.0)                                                 # (chid, 2)
        z = jnp.dot(w2t_ref[...], a, preferred_element_type=jnp.float32)  # (Cout, 2)
        ca = jax.nn.sigmoid(z[:, 0:1] + z[:, 1:2])               # (Cout, 1)

        pooled_col = avg_col * (1.0 + ca)                        # (Cout, 1)
        pooled_ref[...] = pooled_col[None].astype(pooled_ref.dtype)  # (1, Cout, 1)


def _pick_tile_hw(hw, target=512):
    """Single full-HW tile if small, else a 128-multiple tile (last tile masked)."""
    if hw <= target:
        return hw
    assert target % 128 == 0
    return target


def _vmem_limit_bytes(cin, cout, chid, tile_hw, acc_w):
    act = 2 * 2 * cin * tile_hw * 4                 # x, y tiles, double-buffered, f32
    wts = 2 * 2 * cout * cin * 2                    # wxt, wyt, double-buffered, bf16
    small = 2 * 4 * (cout + chid * cout + cout * chid)
    scratch = 2 * cout * acc_w * 4                  # sum / max accumulators
    tmps = 4 * cout * tile_hw * 4                   # h + masked copies headroom
    out = 2 * cout * 4
    need = act + wts + small + scratch + tmps + out
    return int(min(max(2 * need, 32 * 1024 * 1024), 128 * 1024 * 1024))


def feature_fusion_forward(x_nchw, y_nchw, params, *, tile_hw=None,
                           compute_dtype=jnp.bfloat16):
    """x_nchw, y_nchw: (B, Cin, H, W) float32."""
    B, Cin, H, W = x_nchw.shape
    HW = H * W
    # Free, layout-preserving reshape: activations go to the kernel untouched.
    x = x_nchw.reshape(B, Cin, HW)
    y = y_nchw.reshape(B, Cin, HW)

    wxt = params["wxt"].astype(compute_dtype)       # (Cout, Cin) folded conv+BN
    wyt = params["wyt"].astype(compute_dtype)       # (Cout, Cin)
    bconv = params["bconv"]                         # (Cout, 1) folded BN bias, f32
    w1t, w2t = params["w1t"], params["w2t"]         # CA MLP, f32 (tiny)
    Cout = wxt.shape[0]
    chid = w1t.shape[0]

    if tile_hw is None:
        tile_hw = _pick_tile_hw(HW)                 # sweep target per generation
    tile_hw = min(tile_hw, HW)
    if tile_hw != HW and tile_hw % 128 != 0:
        raise ValueError(f"tile_hw={tile_hw} must be a multiple of 128 or == HW")
    n_s = pl.cdiv(HW, tile_hw)
    acc_w = 128 if tile_hw % 128 == 0 else tile_hw
    needs_mask = (HW % tile_hw) != 0

    kernel = functools.partial(_fusion_kernel, inv_hw=1.0 / HW, hw=HW,
                               tile_hw=tile_hw, acc_w=acc_w,
                               needs_mask=needs_mask)

    pooled = pl.pallas_call(
        kernel,
        out_shape=jax.ShapeDtypeStruct((B, Cout, 1), jnp.float32),
        grid_spec=pltpu.PrefetchScalarGridSpec(
            num_scalar_prefetch=0,
            grid=(B, n_s),
            in_specs=[
                pl.BlockSpec((pl.Squeezed(), Cin, tile_hw),
                             lambda b, s: (b, 0, s)),              # x stream (f32)
                pl.BlockSpec((pl.Squeezed(), Cin, tile_hw),
                             lambda b, s: (b, 0, s)),              # y stream (f32)
                pl.BlockSpec((Cout, Cin), lambda b, s: (0, 0)),    # wxt (conv+BN)
                pl.BlockSpec((Cout, Cin), lambda b, s: (0, 0)),    # wyt (conv+BN)
                pl.BlockSpec((Cout, 1), lambda b, s: (0, 0)),      # folded BN bias
                pl.BlockSpec((chid, Cout), lambda b, s: (0, 0)),   # CA fc1
                pl.BlockSpec((Cout, chid), lambda b, s: (0, 0)),   # CA fc2
            ],
            out_specs=pl.BlockSpec((1, Cout, 1), lambda b, s: (b, 0, 0)),
            scratch_shapes=[pltpu.VMEM((Cout, acc_w), jnp.float32),  # running sum
                            pltpu.VMEM((Cout, acc_w), jnp.float32)], # running max
        ),
        compiler_params=pltpu.CompilerParams(
            dimension_semantics=("parallel", "arbitrary"),
            vmem_limit_bytes=_vmem_limit_bytes(Cin, Cout, chid, tile_hw, acc_w)),
    )(x, y, wxt, wyt, bconv, w1t, w2t)

    # Dropout(p=0.5) is identity in eval mode; final Linear is tiny (out dim =
    # num_classes) so it runs in plain JAX.
    # TODO(synk): training-mode dropout (random mask) not implemented.
    return pooled.reshape(B, Cout) @ params["wclf"] + params["bclf"]


def init_params(key, in_chan, out_chan, radio=16, num_classes=1):
    ks = jax.random.split(key, 8)
    eps = 1e-5
    # Conv1x1(2*Cin -> Cout, bias=False); PyTorch weight layout (Cout, 2*Cin).
    w_conv = jax.random.normal(ks[0], (out_chan, 2 * in_chan), jnp.float32) * 0.05
    # BatchNorm2d (eval-mode) parameters, folded into the conv.
    gamma = 1.0 + 0.1 * jax.random.normal(ks[1], (out_chan,), jnp.float32)
    beta = 0.1 * jax.random.normal(ks[2], (out_chan,), jnp.float32)
    run_mean = 0.1 * jax.random.normal(ks[3], (out_chan,), jnp.float32)
    run_var = jnp.abs(1.0 + 0.1 * jax.random.normal(ks[4], (out_chan,), jnp.float32))
    scale = gamma / jnp.sqrt(run_var + eps)
    w_fused = w_conv * scale[:, None]                 # (Cout, 2*Cin)
    b_fused = (beta - run_mean * scale)[:, None]      # (Cout, 1)
    # ChannelAttention fc1 / fc2 (1x1 convs, no bias), PyTorch (out, in) layout.
    chid = max(out_chan // radio, 1)
    w1t = jax.random.normal(ks[5], (chid, out_chan), jnp.float32) * 0.02
    w2t = jax.random.normal(ks[6], (out_chan, chid), jnp.float32) * 0.02
    # Classifier Linear(out_chan -> num_classes).
    wclf = jax.random.normal(ks[7], (out_chan, num_classes), jnp.float32) * 0.02
    bclf = jnp.zeros((1, num_classes), jnp.float32)
    return dict(wxt=w_fused[:, :in_chan], wyt=w_fused[:, in_chan:], bconv=b_fused,
                w1t=w1t, w2t=w2t, wclf=wclf, bclf=bclf)


def _reference(x_nchw, y_nchw, p):
    """Pure-JAX f32 reference of the same forward pass (for verification)."""
    B, Cin, H, W = x_nchw.shape
    x = x_nchw.reshape(B, Cin, H * W)
    y = y_nchw.reshape(B, Cin, H * W)
    wx = p["wxt"].astype(jnp.float32)
    wy = p["wyt"].astype(jnp.float32)
    h = (jnp.einsum("oc,bcp->bop", wx, x) + jnp.einsum("oc,bcp->bop", wy, y)
         + p["bconv"][None])
    h = jnp.maximum(h, 0.0)                              # (B, Cout, HW)
    avg = jnp.mean(h, axis=2, keepdims=True)             # (B, Cout, 1)
    mx = jnp.max(h, axis=2, keepdims=True)               # (B, Cout, 1)

    def mlp(v):
        a = jnp.maximum(jnp.einsum("hc,bcx->bhx", p["w1t"], v), 0.0)
        return jnp.einsum("ch,bhx->bcx", p["w2t"], a)

    ca = jax.nn.sigmoid(mlp(avg) + mlp(mx))              # (B, Cout, 1)
    pooled = (avg * (1.0 + ca))[..., 0]                  # (B, Cout)
    return pooled @ p["wclf"] + p["bclf"]


if __name__ == "__main__":
    # HW = 18*18 = 324: with tile_hw=128 this exercises streaming (3 steps) and
    # the masked last tile (68 valid lanes).
    B, Cin, Cout, H, W = 2, 64, 128, 18, 18
    radio, num_classes = 16, 1

    key = jax.random.PRNGKey(0)
    kx, ky, kp = jax.random.split(key, 3)
    x = jax.random.normal(kx, (B, Cin, H, W), jnp.float32)
    y = jax.random.normal(ky, (B, Cin, H, W), jnp.float32)
    params = init_params(kp, Cin, Cout, radio=radio, num_classes=num_classes)

    # Streaming + masked-last-tile path.
    out = jax.block_until_ready(feature_fusion_forward(x, y, params, tile_hw=128))
    # Single full-HW tile path (default tile picker).
    out_single = jax.block_until_ready(feature_fusion_forward(x, y, params))

    ref = jax.block_until_ready(_reference(x, y, params))
    assert out.shape == (B, num_classes)
    # bf16 MXU inputs -> looser tolerance than pure f32.
    assert jnp.allclose(out, ref, atol=2e-2, rtol=2e-2), (out, ref)
    assert jnp.allclose(out_single, ref, atol=2e-2, rtol=2e-2), (out_single, ref)

    print("KERNEL_OK")
</pallas_src>

<mosaic_0001>
module attributes {stable_mosaic.version = 11 : i64} {
  func.func @_fusion_kernel(%arg0: i32, %arg1: i32, %arg2: memref<1x64x128xf32, #tpu.memory_space<vmem>>, %arg3: memref<1x64x128xf32, #tpu.memory_space<vmem>>, %arg4: memref<128x64xbf16, #tpu.memory_space<vmem>>, %arg5: memref<128x64xbf16, #tpu.memory_space<vmem>>, %arg6: memref<128x1xf32, #tpu.memory_space<vmem>>, %arg7: memref<8x128xf32, #tpu.memory_space<vmem>>, %arg8: memref<128x8xf32, #tpu.memory_space<vmem>>, %arg9: memref<1x128x1xf32, #tpu.memory_space<vmem>>, %arg10: memref<128x128xf32, #tpu.memory_space<vmem>>, %arg11: memref<128x128xf32, #tpu.memory_space<vmem>>) attributes {dimension_semantics = [#tpu.dimension_semantics<parallel>, #tpu.dimension_semantics<arbitrary>], iteration_bounds = array<i64: 2, 3>, scalar_prefetch = 0 : i64, scratch_operands = 2 : i64, tpu.core_type = #tpu.core_type<tc>, window_params = [{transform_indices = @transform_0, window_bounds = array<i64: 1, 64, 128>}, {transform_indices = @transform_1, window_bounds = array<i64: 1, 64, 128>}, {pipeline_mode = #tpu.pipeline_mode<synchronous>, transform_indices = @transform_2, window_bounds = array<i64: 128, 64>}, {pipeline_mode = #tpu.pipeline_mode<synchronous>, transform_indices = @transform_3, window_bounds = array<i64: 128, 64>}, {pipeline_mode = #tpu.pipeline_mode<synchronous>, transform_indices = @transform_4, window_bounds = array<i64: 128, 1>}, {pipeline_mode = #tpu.pipeline_mode<synchronous>, transform_indices = @transform_5, window_bounds = array<i64: 8, 128>}, {pipeline_mode = #tpu.pipeline_mode<synchronous>, transform_indices = @transform_6, window_bounds = array<i64: 128, 8>}, {transform_indices = @transform_7, window_bounds = array<i64: 1, 128, 1>}]} {
    %c0_i32 = arith.constant 0 : i32
    %0 = arith.cmpi eq, %arg1, %c0_i32 : i32
    %1 = arith.extui %0 : i1 to i32
    %c0_i32_0 = arith.constant 0 : i32
    %2 = arith.cmpi ne, %1, %c0_i32_0 : i32
    scf.if %2 {
      %cst_25 = arith.constant 0.000000e+00 : f32
      %42 = vector.broadcast %cst_25 : f32 to vector<128x128xf32>
      %c0_26 = arith.constant 0 : index
      %c0_27 = arith.constant 0 : index
      %43 = vector.load %arg10[%c0_26, %c0_27] : memref<128x128xf32, #tpu.memory_space<vmem>>, vector<128x128xf32>
      tpu.vector_store %arg10[%c0_26, %c0_27], %42 {strides = array<i32>} : memref<128x128xf32, #tpu.memory_space<vmem>>, vector<128x128xf32>,
      %cst_28 = arith.constant 0xFF800000 : f32
      %44 = vector.broadcast %cst_28 : f32 to vector<128x128xf32>
      %c0_29 = arith.constant 0 : index
      %c0_30 = arith.constant 0 : index
      %45 = vector.load %arg11[%c0_29, %c0_30] : memref<128x128xf32, #tpu.memory_space<vmem>>, vector<128x128xf32>
      tpu.vector_store %arg11[%c0_29, %c0_30], %44 {strides = array<i32>} : memref<128x128xf32, #tpu.memory_space<vmem>>, vector<128x128xf32>,
    } else {
    }
    %c0 = arith.constant 0 : index
    %c0_1 = arith.constant 0 : index
    %c0_2 = arith.constant 0 : index
    %3 = vector.load %arg2[%c0, %c0_1, %c0_2] : memref<1x64x128xf32, #tpu.memory_space<vmem>>, vector<1x64x128xf32>
    %4 = vector.shape_cast %3 : vector<1x64x128xf32> to vector<64x128xf32>
    %5 = arith.truncf %4 : vector<64x128xf32> to vector<64x128xbf16>
    %c0_3 = arith.constant 0 : index
    %c0_4 = arith.constant 0 : index
    %c0_5 = arith.constant 0 : index
    %6 = vector.load %arg3[%c0_3, %c0_4, %c0_5] : memref<1x64x128xf32, #tpu.memory_space<vmem>>, vector<1x64x128xf32>
    %7 = vector.shape_cast %6 : vector<1x64x128xf32> to vector<64x128xf32>
    %8 = arith.truncf %7 : vector<64x128xf32> to vector<64x128xbf16>
    %c0_6 = arith.constant 0 : index
    %c0_7 = arith.constant 0 : index
    %9 = vector.load %arg4[%c0_6, %c0_7] : memref<128x64xbf16, #tpu.memory_space<vmem>>, vector<128x64xbf16>
    %cst = arith.constant dense<0.000000e+00> : vector<128x128xf32>
    %10 = tpu.matmul %9, %5, %cst {dimension_numbers = #tpu.dot_dimension_numbers<[1], [0], [0], [1], [0, 0, 1, 1], [], []>} : vector<128x64xbf16>, vector<64x128xbf16>, vector<128x128xf32> -> vector<128x128xf32>
    %c0_8 = arith.constant 0 : index
    %c0_9 = arith.constant 0 : index
    %11 = vector.load %arg5[%c0_8, %c0_9] : memref<128x64xbf16, #tpu.memory_space<vmem>>, vector<128x64xbf16>
    %cst_10 = arith.constant dense<0.000000e+00> : vector<128x128xf32>
    %12 = tpu.matmul %11, %8, %cst_10 {dimension_numbers = #tpu.dot_dimension_numbers<[1], [0], [0], [1], [0, 0, 1, 1], [], []>} : vector<128x64xbf16>, vector<64x128xbf16>, vector<128x128xf32> -> vector<128x128xf32>
    %13 = arith.addf %10, %12 : vector<128x128xf32>
    %c0_11 = arith.constant 0 : index
    %c0_12 = arith.constant 0 : index
    %14 = vector.load %arg6[%c0_11, %c0_12] : memref<128x1xf32, #tpu.memory_space<vmem>>, vector<128x1xf32>
    %15 = vector.broadcast %14 : vector<128x1xf32> to vector<128x128xf32>
    %16 = arith.addf %13, %15 : vector<128x128xf32>
    %cst_13 = arith.constant 0.000000e+00 : f32
    %17 = vector.broadcast %cst_13 : f32 to vector<128x128xf32>
    %18 = arith.maximumf %16, %17 : vector<128x128xf32>
    %19 = tpu.iota {dimensions = array<i32: 1>} : vector<1x128xi32>
    %c128_i32 = arith.constant 128 : i32
    %20 = arith.muli %arg1, %c128_i32 : i32
    %21 = vector.broadcast %20 : i32 to vector<1x128xi32>
    %22 = arith.addi %21, %19 : vector<1x128xi32>
    %c324_i32 = arith.constant 324 : i32
    %23 = vector.broadcast %c324_i32 : i32 to vector<1x128xi32>
    %24 = arith.cmpi slt, %22, %23 : vector<1x128xi32>
    %cst_14 = arith.constant 0.000000e+00 : f32
    %25 = vector.shape_cast %24 : vector<1x128xi1> to vector<1x128xi1>
    %26 = vector.broadcast %25 : vector<1x128xi1> to vector<128x128xi1>
    %27 = vector.broadcast %cst_14 : f32 to vector<128x128xf32>
    %28 = arith.select %26, %18, %27 : vector<128x128xi1>, vector<128x128xf32>
    %cst_15 = arith.constant 0xFF800000 : f32
    %29 = vector.shape_cast %24 : vector<1x128xi1> to vector<1x128xi1>
    %30 = vector.broadcast %29 : vector<1x128xi1> to vector<128x128xi1>
    %31 = vector.broadcast %cst_15 : f32 to vector<128x128xf32>
    %32 = arith.select %30, %18, %31 : vector<128x128xi1>, vector<128x128xf32>
    %c0_16 = arith.constant 0 : index
    %c0_17 = arith.constant 0 : index
    %33 = vector.load %arg10[%c0_16, %c0_17] : memref<128x128xf32, #tpu.memory_space<vmem>>, vector<128x128xf32>
    %34 = arith.addf %33, %28 : vector<128x128xf32>
    %c0_18 = arith.constant 0 : index
    %c0_19 = arith.constant 0 : index
    %35 = vector.load %arg10[%c0_18, %c0_19] : memref<128x128xf32, #tpu.memory_space<vmem>>, vector<128x128xf32>
    tpu.vector_store %arg10[%c0_18, %c0_19], %34 {strides = array<i32>} : memref<128x128xf32, #tpu.memory_space<vmem>>, vector<128x128xf32>,
    %c0_20 = arith.constant 0 : index
    %c0_21 = arith.constant 0 : index
    %36 = vector.load %arg11[%c0_20, %c0_21] : memref<128x128xf32, #tpu.memory_space<vmem>>, vector<128x128xf32>
    %37 = arith.maximumf %36, %32 : vector<128x128xf32>
    %c0_22 = arith.constant 0 : index
    %c0_23 = arith.constant 0 : index
    %38 = vector.load %arg11[%c0_22, %c0_23] : memref<128x128xf32, #tpu.memory_space<vmem>>, vector<128x128xf32>
    tpu.vector_store %arg11[%c0_22, %c0_23], %37 {strides = array<i32>} : memref<128x128xf32, #tpu.memory_space<vmem>>, vector<128x128xf32>,
    %c2_i32 = arith.constant 2 : i32
    %39 = arith.cmpi eq, %arg1, %c2_i32 : i32
    %40 = arith.extui %39 : i1 to i32
    %c0_i32_24 = arith.constant 0 : i32
    %41 = arith.cmpi ne, %40, %c0_i32_24 : i32
    scf.if %41 {
      %c0_25 = arith.constant 0 : index
      %c0_26 = arith.constant 0 : index
      %42 = vector.load %arg10[%c0_25, %c0_26] : memref<128x128xf32, #tpu.memory_space<vmem>>, vector<128x128xf32>
      %cst_27 = arith.constant dense<0.000000e+00> : vector<128xf32>
      %43 = vector.multi_reduction <add>, %42, %cst_27 [1] : vector<128x128xf32> to vector<128xf32>
      %44 = vector.shape_cast %43 : vector<128xf32> to vector<128x1xf32>
      %c0_28 = arith.constant 0 : index
      %c0_29 = arith.constant 0 : index
      %45 = vector.load %arg11[%c0_28, %c0_29] : memref<128x128xf32, #tpu.memory_space<vmem>>, vector<128x128xf32>
      %cst_30 = arith.constant dense<0xFF800000> : vector<128xf32>
      %46 = vector.multi_reduction <maximumf>, %45, %cst_30 [1] : vector<128x128xf32> to vector<128xf32>
      %47 = vector.shape_cast %46 : vector<128xf32> to vector<128x1xf32>
      %cst_31 = arith.constant 0.00308641978 : f32
      %48 = vector.broadcast %cst_31 : f32 to vector<128x1xf32>
      %49 = arith.mulf %44, %48 : vector<128x1xf32>
      %50 = tpu.concatenate %49, %47 in 1 : vector<128x1xf32>, vector<128x1xf32> -> vector<128x2xf32>
      %c0_32 = arith.constant 0 : index
      %c0_33 = arith.constant 0 : index
      %51 = vector.load %arg7[%c0_32, %c0_33] : memref<8x128xf32, #tpu.memory_space<vmem>>, vector<8x128xf32>
      %cst_34 = arith.constant dense<0.000000e+00> : vector<8x2xf32>
      %52 = tpu.matmul %51, %50, %cst_34 {dimension_numbers = #tpu.dot_dimension_numbers<[1], [0], [0], [1], [0, 0, 1, 1], [], []>} : vector<8x128xf32>, vector<128x2xf32>, vector<8x2xf32> -> vector<8x2xf32>
      %cst_35 = arith.constant 0.000000e+00 : f32
      %53 = vector.broadcast %cst_35 : f32 to vector<8x2xf32>
      %54 = arith.maximumf %52, %53 : vector<8x2xf32>
      %c0_36 = arith.constant 0 : index
      %c0_37 = arith.constant 0 : index
      %55 = vector.load %arg8[%c0_36, %c0_37] : memref<128x8xf32, #tpu.memory_space<vmem>>, vector<128x8xf32>
      %cst_38 = arith.constant dense<0.000000e+00> : vector<128x2xf32>
      %56 = tpu.matmul %55, %54, %cst_38 {dimension_numbers = #tpu.dot_dimension_numbers<[1], [0], [0], [1], [0, 0, 1, 1], [], []>} : vector<128x8xf32>, vector<8x2xf32>, vector<128x2xf32> -> vector<128x2xf32>
      %57 = vector.extract_strided_slice %56 {offsets = [0, 0], sizes = [128, 1], strides = [1, 1]} : vector<128x2xf32> to vector<128x1xf32>
      %58 = vector.extract_strided_slice %56 {offsets = [0, 1], sizes = [128, 1], strides = [1, 1]} : vector<128x2xf32> to vector<128x1xf32>
      %59 = arith.addf %57, %58 : vector<128x1xf32>
      %60 = arith.negf %59 : vector<128x1xf32>
      %61 = math.exp %60 : vector<128x1xf32>
      %cst_39 = arith.constant 1.000000e+00 : f32
      %62 = vector.broadcast %cst_39 : f32 to vector<128x1xf32>
      %63 = arith.addf %62, %61 : vector<128x1xf32>
      %64 = arith.divf %62, %63 : vector<128x1xf32>
      %cst_40 = arith.constant 1.000000e+00 : f32
      %65 = vector.broadcast %cst_40 : f32 to vector<128x1xf32>
      %66 = arith.addf %65, %64 : vector<128x1xf32>
      %67 = arith.mulf %49, %66 : vector<128x1xf32>
      %68 = vector.shape_cast %67 : vector<128x1xf32> to vector<1x128x1xf32>
      %c0_41 = arith.constant 0 : index
      %c0_42 = arith.constant 0 : index
      %c0_43 = arith.constant 0 : index
      %69 = vector.load %arg9[%c0_41, %c0_42, %c0_43] : memref<1x128x1xf32, #tpu.memory_space<vmem>>, vector<1x128x1xf32>
      tpu.vector_store %arg9[%c0_41, %c0_42, %c0_43], %68 {strides = array<i32>} : memref<1x128x1xf32, #tpu.memory_space<vmem>>, vector<1x128x1xf32>,
    } else {
    }
    return
  }
  func.func @transform_0(%arg0: i32, %arg1: i32) -> (i32, i32, i32) {
    %c0_i32 = arith.constant 0 : i32
    %c0_i32_0 = arith.constant 0 : i32
    return %arg0, %c0_i32, %arg1 : i32, i32, i32
  }
  func.func @transform_1(%arg0: i32, %arg1: i32) -> (i32, i32, i32) {
    %c0_i32 = arith.constant 0 : i32
    %c0_i32_0 = arith.constant 0 : i32
    return %arg0, %c0_i32, %arg1 : i32, i32, i32
  }
  func.func @transform_2(%arg0: i32, %arg1: i32) -> (i32, i32) {
    %c0_i32 = arith.constant 0 : i32
    %c0_i32_0 = arith.constant 0 : i32
    %c0_i32_1 = arith.constant 0 : i32
    return %c0_i32, %c0_i32_0 : i32, i32
  }
  func.func @transform_3(%arg0: i32, %arg1: i32) -> (i32, i32) {
    %c0_i32 = arith.constant 0 : i32
    %c0_i32_0 = arith.constant 0 : i32
    %c0_i32_1 = arith.constant 0 : i32
    return %c0_i32, %c0_i32_0 : i32, i32
  }
  func.func @transform_4(%arg0: i32, %arg1: i32) -> (i32, i32) {
    %c0_i32 = arith.constant 0 : i32
    %c0_i32_0 = arith.constant 0 : i32
    %c0_i32_1 = arith.constant 0 : i32
    return %c0_i32, %c0_i32_0 : i32, i32
  }
  func.func @transform_5(%arg0: i32, %arg1: i32) -> (i32, i32) {
    %c0_i32 = arith.constant 0 : i32
    %c0_i32_0 = arith.constant 0 : i32
    %c0_i32_1 = arith.constant 0 : i32
    return %c0_i32, %c0_i32_0 : i32, i32
  }
  func.func @transform_6(%arg0: i32, %arg1: i32) -> (i32, i32) {
    %c0_i32 = arith.constant 0 : i32
    %c0_i32_0 = arith.constant 0 : i32
    %c0_i32_1 = arith.constant 0 : i32
    return %c0_i32, %c0_i32_0 : i32, i32
  }
  func.func @transform_7(%arg0: i32, %arg1: i32) -> (i32, i32, i32) {
    %c0_i32 = arith.constant 0 : i32
    %c0_i32_0 = arith.constant 0 : i32
    %c0_i32_1 = arith.constant 0 : i32
    return %arg0, %c0_i32, %c0_i32_0 : i32, i32, i32
  }
}

</mosaic_0001>

<bundles_post_ra>
// kernel: tpu_custom_call.1
= control target key start
LH: loop header
LB: loop body
LE: loop exit
PB: predicated region body
PF: predicated region fallthrough
CT: control target
= control target key end

     0   :  { %s3035_s0 = inlined_call_operand.hbm [shape: f32[2,64,324], index: 0, kind: input, shape index: {}]   ;;  %s3036_s1 = inlined_call_operand.hbm [shape: f32[2,64,324], index: 1, kind: input, shape index: {}]   ;;  %s3037_s2 = inlined_call_operand.vmem [shape: bf16[128,64], index: 2, kind: input, shape index: {}]   ;;  %s3038_s3 = inlined_call_operand.vmem [shape: bf16[128,64], index: 3, kind: input, shape index: {}]   ;;  %s3039_s4 = inlined_call_operand.vmem [shape: f32[128,1], index: 4, kind: input, shape index: {}]   ;;  %s3040_s5 = inlined_call_operand.vmem [shape: f32[8,128], index: 5, kind: input, shape index: {}]   ;;  %s3041_s6 = inlined_call_operand.vmem [shape: f32[128,8], index: 6, kind: input, shape index: {}]   ;;  %s3042_s7 = inlined_call_operand.vmem [shape: f32[2,128,1], index: 7, kind: output, shape index: {}]  }
   0x1   :  { %3048 = sst [smem:[#allocation15_spill]] %s3035_s0 }
   0x2   :  { %3049 = sst [smem:[#allocation16_spill]] %s3041_s6 }
   0x3   :  { %12 = vsyncpa [#allocation5], 0 }
   0x4   :  { %14 = vsyncpa [#allocation5 + $0x1], 0 }
   0x5   :  { %15 = vsyncpa [#allocation7], 0 }
   0x6   :  { %17 = vsyncpa [#allocation7 + $0x1], 0  ;;  %s2255_s24 = smov 0   ;;  %s2257_s25 = smov 0  }
   0x7   :  { %s2259_s26 = smov 0   ;;  %s2261_s27 = smov 0  }
   0x8   :  { %s2263_s28 = smov 0   ;;  %s2265_s29 = smov 0  }
   0x9   :  { %s2267_s30 = smov 0   ;;  %s2269_s8 = smov 0  }
   0xa LB: > { %3050 = sst [smem:[#allocation10_spill]] %s2198_s29  ;;  %s1767_s9 = sadd.s32 4294967295, %s2206_s8   ;;  %s2206_s8 = sphi %s2269_s8, %s23_s8   ;;  %s2202_s30 = sphi %s2267_s30, %s3082_s30   ;;  %s2198_s29 = sphi %s2265_s29, %s3087_s29   ;;  %s2194_s28 = sphi %s2263_s28, %s3086_s28   ;;  %s2190_s27 = sphi %s2261_s27, %s3079_s27   ;;  %s2186_s26 = sphi %s2259_s26, %s3085_s26   ;;  %s2182_s25 = sphi %s2257_s25, %s3084_s25   ;;  %s2178_s24 = sphi %s2255_s24, %s3083_s24  }
   0xb   : > { %3051 = sst [smem:[#allocation11_spill]] %s2202_s30  ;;  %s32_s10 = sadd.s32 1, %s2198_s29 }
   0xc   : > { %p33_p0 = scmp.ge.s32.totalorder %s32_s10, 3  ;;  %s35_s11 = sadd.s32 1, %s2202_s30 }
   0xd   : > { %s44_s12 = sadd.s32 1, %s2186_s26  ;;  %p51_p1 = scmp.ne.s32.totalorder %s2186_s26, %s2182_s25 }
   0xe   : > { %s3089_s10 = smov (%p33_p0, %s32_s10), 0  ;;  %s3091_s11 = smov (!%p33_p0, %s35_s11), %s2202_s30 }
   0xf   : > { %3052 = sst [smem:[#allocation12_spill]] %s3089_s10  ;;  %s40_s13 = ssub.s32 %s2198_s29, %s3089_s10 }
  0x10   : > { %p52_p2 = scmp.eq.s32.totalorder %s2206_s8, 0  ;;  %p37_p3 = scmp.ge.s32.totalorder %s3091_s11, 2 }
  0x11   : > { %p57_p4 = scmp.ne.s32.totalorder %s2182_s25, %s2178_s24  ;;  %p58_p6 = scmp.eq.s32.totalorder %s1767_s9, 0 }
  0x12   : > { %p2306_p5 = por %p52_p2, %p51_p1  ;;  %s3093_s11 = smov (%p37_p3, %s3091_s11), 0 }
  0x13   : > { %3054 = sst [smem:[#allocation13_spill]] %s3093_s11  ;;  %p2312_p7 = por %p58_p6, %p57_p4 }
  0x14   : > { %s39_s16 = ssub.s32 %s2202_s30, %s3093_s11  ;;  %p1937_p8 = scmp.lt.s32.totalorder %s2206_s8, 6 }
  0x15   : > { %s41_s17 = sor.u32 %s40_s13, %s39_s16  ;;  %s2320_s18 = sand.u32 1, %s2186_s26  }
  0x16   : > { %p42_p9 = scmp.eq.s32.totalorder %s41_s17, 0  ;;  %s1771_s19 = sshll.u32 %s2320_s18, 6 }
  0x17   : > { %s1924_s20 = smul.u32 24, %s2202_s30  ;;  %s259_s24 = scalar_lea.vmem [#allocation4], %s1771_s19 }
  0x18   : > { %s2325_s21 = scalar_select %p42_p9, %s2186_s26, %s44_s12  }
  0x19   : > { %s263_s22 = sadd.s32 %s2198_s29, %s1924_s20  ;;  %s268_s9 = sshll.u32 %s259_s24, 4  ;;  %s269_s9 = int_to_ptr.vmem [resolvable:$true] %s268_s9 }
  0x1a   : > { %3056 = sst [smem:[#allocation14_spill]] %s2325_s21  ;;  %s1772_s23 = sshll.u32 %s263_s22, 3 }
  0x1b   : > { %s3057_s0 = sld [smem:[#allocation15_spill]]  ;;  %p2335_p10 = pnand %p1937_p8, %p2306_p5 }
  0x1c   : > { %p1775_p11 = scmp.ge.s32.totalorder %s2206_s8, 1  ;;  %s256_s12 = scalar_lea.sflag [#allocation5], %s2320_s18 }
  0x1d   : > { %s2208_s17 = smov 384   ;;  %s2209_s20 = smov 128  }
  0x1e   : > { %s2210_s22 = smov 8   ;;  %p299_p12 = scmp.lt.s32.totalorder %s2206_s8, 7 }
  0x1f   : > { %s282_s24 = scalar_lea.vmem [#allocation6], %s1771_s19  ;;  %s279_s30 = scalar_lea.sflag [#allocation7], %s2320_s18 }
  0x20   : > { %p300_p13 = pnand %p1775_p11, %p299_p12 }
  0x21   : > { %s265_s11 = scalar_lea.hbm %s3057_s0, %s1772_s23  ;;  %s291_s0 = sshll.u32 %s282_s24, 4  ;;  %s292_s0 = int_to_ptr.vmem [resolvable:$true] %s291_s0 }
  0x22   : > { %s266_s13 = sshll.u32 %s265_s11, 4  ;;  %s288_s11 = scalar_lea.hbm %s3036_s1, %s1772_s23  ;;  %s267_s13 = int_to_ptr.hbm [resolvable:$true] %s266_s13 }
  0x23   : > { %1933 = dma.hbm_to_vmem [thread:$0]  (!%p2335_p10), %s267_s13, 1024, %s269_s9, %s256_s12, %s2208_s17, %s2209_s20, %s2210_s22  }
  0x24   : > { %s289_s14 = sshll.u32 %s288_s11, 4  ;;  %303 = sbr.rel (%p300_p13) target bundleno = 973 (0x3cd), region = 48  ;;  %s290_s14 = int_to_ptr.hbm [resolvable:$true] %s289_s14 }
  0x25   : > { %1936 = dma.hbm_to_vmem [thread:$0]  (!%p2335_p10), %s290_s14, 1024, %s292_s0, %s279_s30, %s2208_s17, %s2209_s20, %s2210_s22  }
  0x26   : > { %s305_s29 = sand.u32 (!%p300_p13), 1, %s2182_s25  }
  0x27   : > { %s1776_s21 = sshll.u32 (!%p300_p13), %s305_s29, 6  ;;  %s306_s9 = scalar_lea.sflag (!%p300_p13), [#allocation5], %s305_s29 }
  0x28   : > { %s2351_s13 = scalar_lea.vmem (!%p300_p13), [#allocation4], %s1776_s21 }
  0x29   : > { %2169 = dma.done.wait (%p2312_p7), %s306_s9, 1024  }
  0x2a   : > { %2171 = vsyncadd (%p2312_p7), %s306_s9, 4294966272  ;;  %s316_s19 = scalar_lea.sflag [#allocation7], %s305_s29  ;;  %s2357_s23 = scalar_lea.vmem [#allocation6], %s1776_s21 }
  0x2b   : > { %2173 = dma.done.wait (%p2312_p7), %s316_s19, 1024  }
  0x2c   : > { %2175 = vsyncadd (%p2312_p7), %s316_s19, 4294966272  ;;  %p356_p0 = scmp.lt.s32.totalorder %s2194_s28, 1  ;;  %p1780_p1 = scmp.ne.s32.totalorder %s2190_s27, 0 }
  0x2e   : > { %s3095_s28 = smov (!%p356_p0, %s2194_s28), 1  ;;  %365 = sbr.rel (%p1780_p1) target bundleno = 84 (0x54), region = 60 }
  0x2f   : > { %s1897_s0 = sshll.u32 %s3095_s28, 7 }
  0x30   : > { %s2368_s16 = scalar_lea.vmem %s3042_s7, %s1897_s0 }
  0x33   : > { %v2211_v0 = vmov 0.0   ;;  %v2212_v1 = vmov -inf  }
  0x34   : > { %366 = vst [vmem:[#allocation2 + $0x30] sm:$0xff] %v2211_v0 }
  0x35   : > { %367 = vst [vmem:[#allocation2] sm:$0xff] %v2211_v0 }
  0x36   : > { %368 = vst [vmem:[#allocation2 + $0x58] sm:$0xff] %v2211_v0 }
  0x37   : > { %369 = vst [vmem:[#allocation2 + $0x18] sm:$0xff] %v2211_v0 }
  0x38   : > { %370 = vst [vmem:[#allocation2 + $0x50] sm:$0xff] %v2211_v0 }
  0x39   : > { %371 = vst [vmem:[#allocation2 + $0x68] sm:$0xff] %v2211_v0 }
  0x3a   : > { %372 = vst [vmem:[#allocation2 + $0x8] sm:$0xff] %v2211_v0 }
  0x3b   : > { %373 = vst [vmem:[#allocation2 + $0x48] sm:$0xff] %v2211_v0 }
  0x3c   : > { %374 = vst [vmem:[#allocation2 + $0x40] sm:$0xff] %v2211_v0 }
  0x3d   : > { %375 = vst [vmem:[#allocation2 + $0x20] sm:$0xff] %v2211_v0 }
  0x3e   : > { %376 = vst [vmem:[#allocation2 + $0x10] sm:$0xff] %v2211_v0 }
  0x3f   : > { %377 = vst [vmem:[#allocation2 + $0x38] sm:$0xff] %v2211_v0 }
  0x40   : > { %378 = vst [vmem:[#allocation2 + $0x60] sm:$0xff] %v2211_v0 }
  0x41   : > { %379 = vst [vmem:[#allocation2 + $0x70] sm:$0xff] %v2211_v0 }
  0x42   : > { %380 = vst [vmem:[#allocation2 + $0x78] sm:$0xff] %v2211_v0 }
  0x43   : > { %381 = vst [vmem:[#allocation2 + $0x28] sm:$0xff] %v2211_v0 }
  0x44   : > { %382 = vst [vmem:[#allocation3 + $0x28] sm:$0xff] %v2212_v1 }
  0x45   : > { %383 = vst [vmem:[#allocation3 + $0x68] sm:$0xff] %v2212_v1 }
  0x46   : > { %384 = vst [vmem:[#allocation3 + $0x10] sm:$0xff] %v2212_v1 }
  0x47   : > { %385 = vst [vmem:[#allocation3 + $0x40] sm:$0xff] %v2212_v1 }
  0x48   : > { %386 = vst [vmem:[#allocation3 + $0x48] sm:$0xff] %v2212_v1 }
  0x49   : > { %387 = vst [vmem:[#allocation3 + $0x30] sm:$0xff] %v2212_v1 }
  0x4a   : > { %388 = vst [vmem:[#allocation3 + $0x70] sm:$0xff] %v2212_v1 }
  0x4b   : > { %389 = vst [vmem:[#allocation3 + $0x38] sm:$0xff] %v2212_v1 }
  0x4c   : > { %390 = vst [vmem:[#allocation3 + $0x20] sm:$0xff] %v2212_v1 }
  0x4d   : > { %391 = vst [vmem:[#allocation3 + $0x78] sm:$0xff] %v2212_v1 }
  0x4e   : > { %392 = vst [vmem:[#allocation3 + $0x18] sm:$0xff] %v2212_v1 }
  0x4f   : > { %393 = vst [vmem:[#allocation3 + $0x58] sm:$0xff] %v2212_v1 }
  0x50   : > { %394 = vst [vmem:[#allocation3] sm:$0xff] %v2212_v1 }
  0x51   : > { %395 = vst [vmem:[#allocation3 + $0x8] sm:$0xff] %v2212_v1 }
  0x52   : > { %396 = vst [vmem:[#allocation3 + $0x60] sm:$0xff] %v2212_v1 }
  0x53   : > { %397 = vst [vmem:[#allocation3 + $0x50] sm:$0xff] %v2212_v1 }
  0x54 PF: > { %v416_v2 = vld [vmem:[%s2357_s23 + $0x30] sm:$0xff]  ;;  %v417_v3 = vld [vmem:[%s2357_s23 + $0x38] sm:$0xff]  ;;  %v414_v7 = vld [vmem:[%s2357_s23 + $0x20] sm:$0xff]  ;;  %v2213_v9 = vmov 0   ;;  %vm494_vm0 = vcmask 523264   ;;  %v809_v62 = vlaneseq  ;;  %s1861_s12 = sshll.u32 %s2190_s27, 7 }
  0x55   : > { %v404_v4 = vld [vmem:[%s2351_s13 + $0x30] sm:$0xff]  ;;  %v421_v5 = vpack.c.bf16 %v417_v3, %v416_v2  ;;  %v405_v6 = vld [vmem:[%s2351_s13 + $0x38] sm:$0xff]  ;;  %v415_v8 = vld [vmem:[%s2357_s23 + $0x28] sm:$0xff]  ;;  %2009 = vset.pattern.permute.xlu0 %v2213_v9  ;;  %2010 = vset.pattern.permute.xlu1 %v2213_v9  ;;  %v812_v2 = vstv %s1861_s12  ;;  %p1862_p2 = scmp.ne.s32.totalorder %s2190_s27, 2 }
  0x56   : > { %v409_v10 = vpack.c.bf16 %v405_v6, %v404_v4  ;;  %v402_v11 = vld [vmem:[%s2351_s13 + $0x20] sm:$0xff]  ;;  %v403_v12 = vld [vmem:[%s2351_s13 + $0x28] sm:$0xff]  ;;  %2011 = vset.pattern.permute.xlu2 %v2213_v9  ;;  %v420_v13 = vpack.c.bf16 %v415_v8, %v414_v7  ;;  %v412_v15 = vld [vmem:[%s2357_s23 + $0x10] sm:$0xff]  ;;  %v810_v1 = vand.u32 127, %v809_v62  ;;  %s3059_s6 = sld [smem:[#allocation16_spill]] (!%p1862_p2)  ;;  %s2214_s18 = smov (!%p1862_p2), 127  }
  0x57   : > { %523 = vmatpush.bf16.msra.mxu0 %v421_v5  ;;  %1914 = vmatpush.bf16.msra.mxu2 %v421_v5  ;;  %v408_v14 = vpack.c.bf16 %v403_v12, %v402_v11  ;;  %v413_v16 = vld [vmem:[%s2357_s23 + $0x18] sm:$0xff]  ;;  %v681_v17 = vld [vmem:[%s3039_s4] sm:$0xff]  ;;  %v400_v18 = vld [vmem:[%s2351_s13 + $0x10] sm:$0xff] }
  0x58   : > { %636 = vmatpush.bf16.msra.mxu1 %v409_v10  ;;  %1918 = vmatpush.bf16.msra.mxu3 %v409_v10  ;;  %v401_v19 = vld [vmem:[%s2351_s13 + $0x18] sm:$0xff]  ;;  %v419_v20 = vpack.c.bf16 %v413_v16, %v412_v15  ;;  %v683_v21 = vld [vmem:[%s3039_s4 + $0x10] sm:$0xff]  ;;  %v410_v23 = vld [vmem:[%s2357_s23] sm:$0xff]  ;;  %v2506_v5 = vadd.s32 %v812_v2, %v810_v1 }
  0x59   : > { %699 = vperm.xlu0 %2009, %v681_v17   ;;  %v407_v22 = vpack.c.bf16 %v401_v19, %v400_v18  ;;  %v411_v24 = vld [vmem:[%s2357_s23 + $0x8] sm:$0xff]  ;;  %v398_v25 = vld [vmem:[%s2351_s13] sm:$0xff]  ;;  %709 = vperm.xlu1 %2010, %v683_v21   ;;  %v684_v33 = vld [vmem:[%s3039_s4 + $0x18] sm:$0xff] }
  0x5a   : > { %v399_v26 = vld [vmem:[%s2351_s13 + $0x8] sm:$0xff]  ;;  %v685_v28 = vld [vmem:[%s3039_s4 + $0x20] sm:$0xff]  ;;  %v418_v29 = vpack.c.bf16 %v411_v24, %v410_v23  ;;  %v687_v36 = vld [vmem:[%s3039_s4 + $0x30] sm:$0xff]  ;;  %vm814_vm1 = vcmp.lt.s32.totalorder %v2506_v5, 324 }
  0x5b   : > { %524 = vmatpush.bf16.msra.mxu0 %v420_v13  ;;  %1915 = vmatpush.bf16.msra.mxu2 %v420_v13  ;;  %v682_v27 = vld [vmem:[%s3039_s4 + $0x8] sm:$0xff]  ;;  %v406_v30 = vpack.c.bf16 %v399_v26, %v398_v25  ;;  %v1906_v31 = vld [vmem:[%s3038_s3] sm:$0xff]  ;;  %v688_v38 = vld [vmem:[%s3039_s4 + $0x38] sm:$0xff] }
  0x5c   : > { %637 = vmatpush.bf16.msra.mxu1 %v408_v14  ;;  %1919 = vmatpush.bf16.msra.mxu3 %v408_v14  ;;  %v1910_v32 = vld [vmem:[%s3038_s3 + $0x20] sm:$0xff]  ;;  %v686_v37 = vld [vmem:[%s3039_s4 + $0x28] sm:$0xff]  ;;  %v691_v43 = vld [vmem:[%s3039_s4 + $0x50] sm:$0xff] }
  0x5d   : > { %719 = vperm.xlu2 %2011, %v685_v28   ;;  %v1898_v34 = vld [vmem:[%s3037_s2] sm:$0xff]  ;;  %v690_v39 = vld [vmem:[%s3039_s4 + $0x48] sm:$0xff]  ;;  %v692_v47 = vld [vmem:[%s3039_s4 + $0x58] sm:$0xff] }
  0x5e   : > { %v1902_v35 = vld [vmem:[%s3037_s2 + $0x20] sm:$0xff]  ;;  %v1907_v41 = vld [vmem:[%s3038_s3 + $0x8] sm:$0xff]  ;;  %v696_v49 = vld [vmem:[%s3039_s4 + $0x78] sm:$0xff] }
  0x5f   : > { %525 = vmatpush.bf16.msra.mxu0 %v419_v20  ;;  %1916 = vmatpush.bf16.msra.mxu2 %v419_v20  ;;  %v689_v40 = vld [vmem:[%s3039_s4 + $0x40] sm:$0xff]  ;;  %v1911_v42 = vld [vmem:[%s3038_s3 + $0x28] sm:$0xff]  ;;  %v695_v50 = vld [vmem:[%s3039_s4 + $0x70] sm:$0xff] }
  0x60   : > { %638 = vmatpush.bf16.msra.mxu1 %v407_v22  ;;  %1920 = vmatpush.bf16.msra.mxu3 %v407_v22  ;;  %v1899_v44 = vld [vmem:[%s3037_s2 + $0x8] sm:$0xff]  ;;  %v693_v46 = vld [vmem:[%s3039_s4 + $0x60] sm:$0xff]  ;;  %v1908_v51 = vld [vmem:[%s3038_s3 + $0x10] sm:$0xff] }
  0x61   : > { %704 = vperm.xlu0 %2009, %v682_v27   ;;  %714 = vperm.xlu1 %2010, %v684_v33   ;;  %v1903_v45 = vld [vmem:[%s3037_s2 + $0x28] sm:$0xff]  ;;  %v1912_v52 = vld [vmem:[%s3038_s3 + $0x30] sm:$0xff]  ;;  %v1909_v55 = vld [vmem:[%s3038_s3 + $0x18] sm:$0xff] }
  0x62   : > { %v694_v48 = vld [vmem:[%s3039_s4 + $0x68] sm:$0xff]  ;;  %v1900_v53 = vld [vmem:[%s3037_s2 + $0x10] sm:$0xff]  ;;  %v1913_v56 = vld [vmem:[%s3038_s3 + $0x38] sm:$0xff] }
  0x63   : > { %526 = vmatpush.bf16.msra.mxu0 %v418_v29  ;;  %1917 = vmatpush.bf16.msra.mxu2 %v418_v29  ;;  %v1904_v54 = vld [vmem:[%s3037_s2 + $0x30] sm:$0xff]  ;;  %v1901_v57 = vld [vmem:[%s3037_s2 + $0x18] sm:$0xff]  ;;  %v897_v11 = vld [vmem:[#allocation3 + $0x28] sm:$0xff] }
  0x64   : > { %639 = vmatpush.bf16.msra.mxu1 %v406_v30  ;;  %1921 = vmatpush.bf16.msra.mxu3 %v406_v30  ;;  %v1905_v58 = vld [vmem:[%s3037_s2 + $0x38] sm:$0xff]  ;;  %v849_v10 = vld [vmem:[#allocation2 + $0x30] sm:$0xff]  ;;  %v857_v25 = vld [vmem:[#allocation2 + $0x40] sm:$0xff] }
  0x65   : > { %724 = vperm.xlu2 %2011, %v686_v37   ;;  %v905_v26 = vld [vmem:[#allocation3 + $0x20] sm:$0xff] }
  0x66   : > { %1813 = vmatmul.msk.bf16.vlgmr.msra.gmra.mxu0 %vm494_vm0, %v1906_v31  ;;  %1817 = vmatmul.msk.bf16.vlgmr.msra.gmra.mxu2 %vm494_vm0, %v1910_v32  ;;  %v850_v33 = vld [vmem:[#allocation2] sm:$0xff] }
  0x67   : > { %1853 = vmatmul.msk.bf16.vlgmr.msra.gmra.mxu1 %vm494_vm0, %v1898_v34  ;;  %1857 = vmatmul.msk.bf16.vlgmr.msra.gmra.mxu3 %vm494_vm0, %v1902_v35  ;;  %v898_v34 = vld [vmem:[#allocation3 + $0x68] sm:$0xff] }
  0x69   : > { %729 = vperm.xlu0 %2009, %v687_v36   ;;  %734 = vperm.xlu1 %2010, %v688_v38  }
  0x6d   : > { %739 = vperm.xlu2 %2011, %v689_v40  }
  0x71   : > { %744 = vperm.xlu0 %2009, %v690_v39   ;;  %749 = vperm.xlu1 %2010, %v691_v43  }
  0x75   : > { %754 = vperm.xlu2 %2011, %v692_v47  }
  0x76   : > { %1814 = vmatmul.msk.bf16.gmra.mxu0 %vm494_vm0, %v1907_v41  ;;  %1818 = vmatmul.msk.bf16.gmra.mxu2 %vm494_vm0, %v1911_v42 }
  0x77   : > { %1854 = vmatmul.msk.bf16.gmra.mxu1 %vm494_vm0, %v1899_v44  ;;  %1858 = vmatmul.msk.bf16.gmra.mxu3 %vm494_vm0, %v1903_v45 }
  0x79   : > { %759 = vperm.xlu0 %2009, %v693_v46   ;;  %764 = vperm.xlu1 %2010, %v694_v48  }
  0x7d   : > { %769 = vperm.xlu2 %2011, %v695_v50   ;;  %v858_v50 = vld [vmem:[#allocation2 + $0x20] sm:$0xff] }
  0x81   : > { %774 = vperm.xlu0 %2009, %v696_v49  }
  0x86   : > { %1815 = vmatmul.msk.bf16.gmra.mxu0 %vm494_vm0, %v1908_v51  ;;  %1819 = vmatmul.msk.bf16.gmra.mxu2 %vm494_vm0, %v1912_v52  ;;  %v906_v51 = vld [vmem:[#allocation3 + $0x78] sm:$0xff] }
  0x87   : > { %1855 = vmatmul.msk.bf16.gmra.mxu1 %vm494_vm0, %v1900_v53  ;;  %1859 = vmatmul.msk.bf16.gmra.mxu3 %vm494_vm0, %v1904_v54 }
  0x96   : > { %1816 = vmatmul.msk.bf16.gmra.mxu0 %vm494_vm0, %v1909_v55  ;;  %1820 = vmatmul.msk.bf16.gmra.mxu2 %vm494_vm0, %v1913_v56  ;;  %v851_v56 = vld [vmem:[#allocation2 + $0x58] sm:$0xff] }
  0x97   : > { %1856 = vmatmul.msk.bf16.gmra.mxu1 %vm494_vm0, %v1901_v57  ;;  %1860 = vmatmul.msk.bf16.gmra.mxu3 %vm494_vm0, %v1905_v58  ;;  %v899_v57 = vld [vmem:[#allocation3 + $0x10] sm:$0xff] }
  0xb7   : > { %v2499_v59 = vpop.permute.xlu2 %719 }
  0xbf   : > { %v2504_v63 = vpop.permute.xlu2 %724 }
  0xc7   : > { %v740_v13 = vpop.permute.xlu2 %739 }
  0xcb   : > { %v700_v60 = vpop.permute.xlu0 %699  ;;  %v2501_v61 = vpop.permute.xlu1 %709 }
  0xd3   : > { %v705_v0 = vpop.permute.xlu0 %704  ;;  %v2508_v7 = vpop.permute.xlu1 %714 }
  0xdb   : > { %v2511_v14 = vpop.permute.xlu0 %729  ;;  %v2517_v29 = vpop.permute.xlu1 %734 }
  0xe3   : > { %v528_v3 = vpop.f32.mrf.mxu0  ;;  %v745_v43 = vpop.permute.xlu0 %744 }
  0xe4   : > { %v641_v4 = vpop.f32.mrf.mxu1  ;;  %v750_v1 = vpop.permute.xlu1 %749 }
  0xe5   : > { %v642_v6 = vadd.f32 %v641_v4, %v528_v3 }
  0xe7   : > { %v777_v8 = vadd.f32 %v700_v60, %v642_v6 }
  0xe9   : > { %v793_v9 = vmax.f32 %v777_v8, 0.0  ;;  %v548_v12 = vpop.f32.mrf.mxu2 }
  0xea   : > { %v661_v15 = vpop.f32.mrf.mxu3 }
  0xeb   : > { %v817_v16 = vsel %vm814_vm1, %v793_v9, 0.0  ;;  %v833_v17 = vsel %vm814_vm1, %v793_v9, -inf  ;;  %v662_v18 = vadd.f32 %v661_v15, %v548_v12  ;;  %v530_v19 = vpop.f32.mrf.mxu0  ;;  %v859_v12 = vld [vmem:[#allocation2 + $0x10] sm:$0xff] }
  0xec   : > { %v865_v20 = vadd.f32 %v849_v10, %v817_v16  ;;  %v913_v21 = vmax.f32 %v897_v11, %v833_v17  ;;  %v643_v22 = vpop.f32.mrf.mxu1 }
  0xed   : > { %v785_v23 = vadd.f32 %v740_v13, %v662_v18  ;;  %v644_v24 = vadd.f32 %v643_v22, %v530_v19  ;;  %v907_v13 = vld [vmem:[#allocation3 + $0x18] sm:$0xff] }
  0xee   : > { %881 = vst [vmem:[#allocation2 + $0x30] sm:$0xff] %v865_v20  ;;  %v852_v20 = vld [vmem:[#allocation2 + $0x18] sm:$0xff] }
  0xef   : > { %929 = vst [vmem:[#allocation3 + $0x28] sm:$0xff] %v913_v21  ;;  %v801_v27 = vmax.f32 %v785_v23, 0.0  ;;  %v778_v28 = vadd.f32 %v705_v0, %v644_v24  ;;  %v900_v21 = vld [vmem:[#allocation3 + $0x40] sm:$0xff] }
  0xf1   : > { %v825_v30 = vsel %vm814_vm1, %v801_v27, 0.0  ;;  %v841_v31 = vsel %vm814_vm1, %v801_v27, -inf  ;;  %v794_v32 = vmax.f32 %v778_v28, 0.0  ;;  %v550_v35 = vpop.f32.mrf.mxu2 }
  0xf2   : > { %v873_v36 = vadd.f32 %v857_v25, %v825_v30  ;;  %v921_v37 = vmax.f32 %v905_v26, %v841_v31  ;;  %v663_v38 = vpop.f32.mrf.mxu3  ;;  %v755_v30 = vpop.permute.xlu2 %754 }
  0xf3   : > { %v818_v39 = vsel %vm814_vm1, %v794_v32, 0.0  ;;  %v834_v40 = vsel %vm814_vm1, %v794_v32, -inf  ;;  %v664_v41 = vadd.f32 %v663_v38, %v550_v35  ;;  %v533_v42 = vpop.f32.mrf.mxu0  ;;  %v908_v38 = vld [vmem:[#allocation3 + $0x58] sm:$0xff] }
  0xf4   : > { %889 = vst [vmem:[#allocation2 + $0x40] sm:$0xff] %v873_v36  ;;  %v866_v44 = vadd.f32 %v850_v33, %v818_v39  ;;  %v914_v45 = vmax.f32 %v898_v34, %v834_v40  ;;  %v646_v46 = vpop.f32.mrf.mxu1 }
  0xf5   : > { %937 = vst [vmem:[#allocation3 + $0x20] sm:$0xff] %v921_v37  ;;  %v786_v47 = vadd.f32 %v745_v43, %v664_v41  ;;  %v647_v48 = vadd.f32 %v646_v46, %v533_v42  ;;  %v860_v37 = vld [vmem:[#allocation2 + $0x38] sm:$0xff]  ;;  %v853_v43 = vld [vmem:[#allocation2 + $0x50] sm:$0xff] }
  0xf6   : > { %882 = vst [vmem:[#allocation2] sm:$0xff] %v866_v44  ;;  %v901_v44 = vld [vmem:[#allocation3 + $0x48] sm:$0xff] }
  0xf7   : > { %930 = vst [vmem:[#allocation3 + $0x68] sm:$0xff] %v914_v45  ;;  %v802_v49 = vmax.f32 %v786_v47, 0.0  ;;  %v779_v52 = vadd.f32 %v2501_v61, %v647_v48 }
  0xf9   : > { %v826_v53 = vsel %vm814_vm1, %v802_v49, 0.0  ;;  %v842_v54 = vsel %vm814_vm1, %v802_v49, -inf  ;;  %v795_v55 = vmax.f32 %v779_v52, 0.0  ;;  %v553_v58 = vpop.f32.mrf.mxu2  ;;  %v760_v52 = vpop.permute.xlu0 %759 }
  0xfa   : > { %v874_v60 = vadd.f32 %v858_v50, %v826_v53  ;;  %v922_v62 = vmax.f32 %v906_v51, %v842_v54  ;;  %v666_v0 = vpop.f32.mrf.mxu3 }
  0xfb   : > { %v819_v2 = vsel %vm814_vm1, %v795_v55, 0.0  ;;  %v835_v61 = vsel %vm814_vm1, %v795_v55, -inf  ;;  %v667_v3 = vadd.f32 %v666_v0, %v553_v58  ;;  %v535_v4 = vpop.f32.mrf.mxu0 }
  0xfc   : > { %890 = vst [vmem:[#allocation2 + $0x20] sm:$0xff] %v874_v60  ;;  %v867_v6 = vadd.f32 %v851_v56, %v819_v2  ;;  %v915_v8 = vmax.f32 %v899_v57, %v835_v61  ;;  %v648_v9 = vpop.f32.mrf.mxu1  ;;  %v861_v60 = vld [vmem:[#allocation2 + $0x60] sm:$0xff] }
  0xfd   : > { %938 = vst [vmem:[#allocation3 + $0x78] sm:$0xff] %v922_v62  ;;  %v787_v10 = vadd.f32 %v750_v1, %v667_v3  ;;  %v649_v11 = vadd.f32 %v648_v9, %v535_v4  ;;  %v909_v62 = vld [vmem:[#allocation3] sm:$0xff]  ;;  %v854_v3 = vld [vmem:[#allocation2 + $0x68] sm:$0xff]  ;;  %v902_v4 = vld [vmem:[#allocation3 + $0x30] sm:$0xff] }
  0xfe   : > { %883 = vst [vmem:[#allocation2 + $0x58] sm:$0xff] %v867_v6 }
  0xff   : > { %931 = vst [vmem:[#allocation3 + $0x10] sm:$0xff] %v915_v8  ;;  %v803_v15 = vmax.f32 %v787_v10, 0.0  ;;  %v780_v16 = vadd.f32 %v2508_v7, %v649_v11 }
 0x101   : > { %v827_v17 = vsel %vm814_vm1, %v803_v15, 0.0  ;;  %v843_v18 = vsel %vm814_vm1, %v803_v15, -inf  ;;  %v796_v19 = vmax.f32 %v780_v16, 0.0  ;;  %v555_v22 = vpop.f32.mrf.mxu2  ;;  %v765_v15 = vpop.permute.xlu1 %764 }
 0x102   : > { %v875_v23 = vadd.f32 %v859_v12, %v827_v17  ;;  %v923_v24 = vmax.f32 %v907_v13, %v843_v18  ;;  %v668_v25 = vpop.f32.mrf.mxu3 }
 0x103   : > { %v820_v26 = vsel %vm814_vm1, %v796_v19, 0.0  ;;  %v836_v27 = vsel %vm814_vm1, %v796_v19, -inf  ;;  %v669_v7 = vadd.f32 %v668_v25, %v555_v22  ;;  %v538_v28 = vpop.f32.mrf.mxu0  ;;  %v862_v22 = vld [vmem:[#allocation2 + $0x70] sm:$0xff] }
 0x104   : > { %891 = vst [vmem:[#allocation2 + $0x10] sm:$0xff] %v875_v23  ;;  %v868_v31 = vadd.f32 %v852_v20, %v820_v26  ;;  %v916_v32 = vmax.f32 %v900_v21, %v836_v27  ;;  %v651_v33 = vpop.f32.mrf.mxu1  ;;  %v910_v23 = vld [vmem:[#allocation3 + $0x8] sm:$0xff] }
 0x105   : > { %939 = vst [vmem:[#allocation3 + $0x18] sm:$0xff] %v923_v24  ;;  %v788_v34 = vadd.f32 %v755_v30, %v669_v7  ;;  %v652_v35 = vadd.f32 %v651_v33, %v538_v28  ;;  %v855_v7 = vld [vmem:[#allocation2 + $0x8] sm:$0xff]  ;;  %v903_v28 = vld [vmem:[#allocation3 + $0x70] sm:$0xff] }
 0x106   : > { %884 = vst [vmem:[#allocation2 + $0x18] sm:$0xff] %v868_v31 }
 0x107   : > { %932 = vst [vmem:[#allocation3 + $0x40] sm:$0xff] %v916_v32  ;;  %v804_v36 = vmax.f32 %v788_v34, 0.0  ;;  %v781_v39 = vadd.f32 %v2499_v59, %v652_v35 }
 0x109   : > { %v828_v40 = vsel %vm814_vm1, %v804_v36, 0.0  ;;  %v844_v41 = vsel %vm814_vm1, %v804_v36, -inf  ;;  %v797_v42 = vmax.f32 %v781_v39, 0.0  ;;  %v558_v45 = vpop.f32.mrf.mxu2 }
 0x10a   : > { %v876_v46 = vadd.f32 %v860_v37, %v828_v40  ;;  %v924_v47 = vmax.f32 %v908_v38, %v844_v41  ;;  %v671_v48 = vpop.f32.mrf.mxu3  ;;  %v770_v37 = vpop.permute.xlu2 %769 }
 0x10b   : > { %v821_v49 = vsel %vm814_vm1, %v797_v42, 0.0  ;;  %v837_v50 = vsel %vm814_vm1, %v797_v42, -inf  ;;  %v672_v59 = vadd.f32 %v671_v48, %v558_v45  ;;  %v540_v51 = vpop.f32.mrf.mxu0  ;;  %v911_v45 = vld [vmem:[#allocation3 + $0x60] sm:$0xff] }
 0x10c   : > { %892 = vst [vmem:[#allocation2 + $0x38] sm:$0xff] %v876_v46  ;;  %v869_v53 = vadd.f32 %v853_v43, %v821_v49  ;;  %v917_v54 = vmax.f32 %v901_v44, %v837_v50  ;;  %v653_v55 = vpop.f32.mrf.mxu1  ;;  %v863_v44 = vld [vmem:[#allocation2 + $0x78] sm:$0xff]  ;;  %v856_v50 = vld [vmem:[#allocation2 + $0x48] sm:$0xff] }
 0x10d   : > { %940 = vst [vmem:[#allocation3 + $0x58] sm:$0xff] %v924_v47  ;;  %v789_v56 = vadd.f32 %v760_v52, %v672_v59  ;;  %v654_v57 = vadd.f32 %v653_v55, %v540_v51  ;;  %v904_v59 = vld [vmem:[#allocation3 + $0x38] sm:$0xff] }
 0x10e   : > { %885 = vst [vmem:[#allocation2 + $0x50] sm:$0xff] %v869_v53 }
 0x10f   : > { %933 = vst [vmem:[#allocation3 + $0x48] sm:$0xff] %v917_v54  ;;  %v805_v58 = vmax.f32 %v789_v56, 0.0  ;;  %v782_v0 = vadd.f32 %v2504_v63, %v654_v57  ;;  %v775_v57 = vpop.permute.xlu0 %774 }
 0x111   : > { %v829_v1 = vsel %vm814_vm1, %v805_v58, 0.0  ;;  %v845_v2 = vsel %vm814_vm1, %v805_v58, -inf  ;;  %v798_v61 = vmax.f32 %v782_v0, 0.0  ;;  %v560_v6 = vpop.f32.mrf.mxu2 }
 0x112   : > { %v877_v8 = vadd.f32 %v861_v60, %v829_v1  ;;  %v925_v9 = vmax.f32 %v909_v62, %v845_v2  ;;  %v673_v10 = vpop.f32.mrf.mxu3  ;;  %v864_v1 = vld [vmem:[#allocation2 + $0x28] sm:$0xff]  ;;  %v912_v2 = vld [vmem:[#allocation3 + $0x50] sm:$0xff] }
 0x113   : > { %v822_v11 = vsel %vm814_vm1, %v798_v61, 0.0  ;;  %v838_v12 = vsel %vm814_vm1, %v798_v61, -inf  ;;  %v674_v63 = vadd.f32 %v673_v10, %v560_v6  ;;  %v543_v13 = vpop.f32.mrf.mxu0 }
 0x114   : > { %893 = vst [vmem:[#allocation2 + $0x60] sm:$0xff] %v877_v8  ;;  %v870_v16 = vadd.f32 %v854_v3, %v822_v11  ;;  %v918_v17 = vmax.f32 %v902_v4, %v838_v12  ;;  %v656_v18 = vpop.f32.mrf.mxu1 }
 0x115   : > { %941 = vst [vmem:[#allocation3] sm:$0xff] %v925_v9  ;;  %v790_v19 = vadd.f32 %v765_v15, %v674_v63  ;;  %v657_v20 = vadd.f32 %v656_v18, %v543_v13 }
 0x116   : > { %886 = vst [vmem:[#allocation2 + $0x68] sm:$0xff] %v870_v16 }
 0x117   : > { %934 = vst [vmem:[#allocation3 + $0x30] sm:$0xff] %v918_v17  ;;  %v806_v21 = vmax.f32 %v790_v19, 0.0  ;;  %v783_v24 = vadd.f32 %v2511_v14, %v657_v20 }
 0x119   : > { %v830_v25 = vsel %vm814_vm1, %v806_v21, 0.0  ;;  %v846_v26 = vsel %vm814_vm1, %v806_v21, -inf  ;;  %v799_v27 = vmax.f32 %v783_v24, 0.0  ;;  %v563_v30 = vpop.f32.mrf.mxu2 }
 0x11a   : > { %v878_v31 = vadd.f32 %v862_v22, %v830_v25  ;;  %v926_v32 = vmax.f32 %v910_v23, %v846_v26  ;;  %v676_v33 = vpop.f32.mrf.mxu3 }
 0x11b   : > { %v823_v34 = vsel %vm814_vm1, %v799_v27, 0.0  ;;  %v839_v35 = vsel %vm814_vm1, %v799_v27, -inf  ;;  %v677_v14 = vadd.f32 %v676_v33, %v563_v30  ;;  %v545_v36 = vpop.f32.mrf.mxu0 }
 0x11c   : > { %894 = vst [vmem:[#allocation2 + $0x70] sm:$0xff] %v878_v31  ;;  %v871_v38 = vadd.f32 %v855_v7, %v823_v34  ;;  %v919_v39 = vmax.f32 %v903_v28, %v839_v35  ;;  %v658_v40 = vpop.f32.mrf.mxu1 }
 0x11d   : > { %942 = vst [vmem:[#allocation3 + $0x8] sm:$0xff] %v926_v32  ;;  %v791_v41 = vadd.f32 %v770_v37, %v677_v14  ;;  %v659_v42 = vadd.f32 %v658_v40, %v545_v36 }
 0x11e   : > { %887 = vst [vmem:[#allocation2 + $0x8] sm:$0xff] %v871_v38 }
 0x11f   : > { %935 = vst [vmem:[#allocation3 + $0x70] sm:$0xff] %v919_v39  ;;  %v807_v43 = vmax.f32 %v791_v41, 0.0  ;;  %v784_v46 = vadd.f32 %v2517_v29, %v659_v42 }
 0x121   : > { %v831_v47 = vsel %vm814_vm1, %v807_v43, 0.0  ;;  %v847_v48 = vsel %vm814_vm1, %v807_v43, -inf  ;;  %v800_v49 = vmax.f32 %v784_v46, 0.0  ;;  %v565_v51 = vpop.f32.mrf.mxu2 }
 0x122   : > { %v879_v52 = vadd.f32 %v863_v44, %v831_v47  ;;  %v927_v53 = vmax.f32 %v911_v45, %v847_v48  ;;  %v678_v54 = vpop.f32.mrf.mxu3 }
 0x123   : > { %v824_v55 = vsel %vm814_vm1, %v800_v49, 0.0  ;;  %v840_v56 = vsel %vm814_vm1, %v800_v49, -inf  ;;  %v679_v29 = vadd.f32 %v678_v54, %v565_v51 }
 0x124   : > { %895 = vst [vmem:[#allocation2 + $0x78] sm:$0xff] %v879_v52  ;;  %v872_v58 = vadd.f32 %v856_v50, %v824_v55  ;;  %v920_v60 = vmax.f32 %v904_v59, %v840_v56 }
 0x125   : > { %943 = vst [vmem:[#allocation3 + $0x60] sm:$0xff] %v927_v53  ;;  %v792_v62 = vadd.f32 %v775_v57, %v679_v29 }
 0x126   : > { %888 = vst [vmem:[#allocation2 + $0x48] sm:$0xff] %v872_v58 }
 0x127   : > { %936 = vst [vmem:[#allocation3 + $0x38] sm:$0xff] %v920_v60  ;;  %v808_v0 = vmax.f32 %v792_v62, 0.0 }
 0x129   : > { %v832_v61 = vsel %vm814_vm1, %v808_v0, 0.0  ;;  %v848_v3 = vsel %vm814_vm1, %v808_v0, -inf  ;;  %948 = sbr.rel (%p1862_p2) target bundleno = 973 (0x3cd), region = 64 }
 0x12a   : > { %v880_v4 = vadd.f32 %v864_v1, %v832_v61  ;;  %v928_v6 = vmax.f32 %v912_v2, %v848_v3 }
 0x12c   : > { %896 = vst [vmem:[#allocation2 + $0x28] sm:$0xff] %v880_v4 }
 0x12d   : > { %944 = vst [vmem:[#allocation3 + $0x50] sm:$0xff] %v928_v6 }
 0x12e   : > { %v1011_v10 = vld [vmem:[#allocation3 + $0x60] sm:$0xff]  ;;  %v963_v11 = vld [vmem:[#allocation2 + $0x78] sm:$0xff]  ;;  %v962_v12 = vld [vmem:[#allocation2 + $0x70] sm:$0xff]  ;;  %vm1061_vm2 = vcmask 7168   ;;  %vm1116_vm3 = vcmask 64512  }
 0x12f   : > { %1041 = vmax.xlane.f32.xlu2 %v1011_v10  ;;  %v961_v63 = vld [vmem:[#allocation2 + $0x60] sm:$0xff]  ;;  %v1010_v5 = vld [vmem:[#allocation3 + $0x8] sm:$0xff]  ;;  %v960_v13 = vld [vmem:[#allocation2 + $0x38] sm:$0xff] }
 0x130   : > { %v1009_v15 = vld [vmem:[#allocation3] sm:$0xff]  ;;  %v1008_v16 = vld [vmem:[#allocation3 + $0x58] sm:$0xff]  ;;  %v959_v17 = vld [vmem:[#allocation2 + $0x10] sm:$0xff] }
 0x131   : > { %v958_v18 = vld [vmem:[#allocation2 + $0x20] sm:$0xff]  ;;  %v1007_v19 = vld [vmem:[#allocation3 + $0x18] sm:$0xff]  ;;  %v956_v23 = vld [vmem:[#allocation2 + $0x48] sm:$0xff] }
 0x132   : > { %v957_v20 = vld [vmem:[#allocation2 + $0x40] sm:$0xff]  ;;  %v1006_v21 = vld [vmem:[#allocation3 + $0x78] sm:$0xff]  ;;  %v955_v24 = vld [vmem:[#allocation2 + $0x8] sm:$0xff] }
 0x133   : > { %v964_v9 = vld [vmem:[#allocation2 + $0x28] sm:$0xff]  ;;  %v1005_v22 = vld [vmem:[#allocation3 + $0x20] sm:$0xff]  ;;  %v1004_v25 = vld [vmem:[#allocation3 + $0x38] sm:$0xff] }
 0x134   : > { %v1012_v8 = vld [vmem:[#allocation3 + $0x50] sm:$0xff]  ;;  %995 = vadd.xlane.f32.xlu0 %v964_v9  ;;  %v954_v26 = vld [vmem:[#allocation2 + $0x68] sm:$0xff]  ;;  %v952_v30 = vld [vmem:[#allocation2 + $0x18] sm:$0xff] }
 0x135   : > { %1043 = vmax.xlane.f32.xlu1 %v1012_v8  ;;  %v1003_v27 = vld [vmem:[#allocation3 + $0x70] sm:$0xff]  ;;  %v1001_v31 = vld [vmem:[#allocation3 + $0x48] sm:$0xff]  ;;  %v951_v32 = vld [vmem:[#allocation2 + $0x58] sm:$0xff] }
 0x136   : > { %v1002_v7 = vld [vmem:[#allocation3 + $0x30] sm:$0xff]  ;;  %v1000_v33 = vld [vmem:[#allocation3 + $0x40] sm:$0xff]  ;;  %v998_v36 = vld [vmem:[#allocation3 + $0x68] sm:$0xff] }
 0x137   : > { %989 = vadd.xlane.f32.xlu2 %v961_v63  ;;  %v953_v28 = vld [vmem:[#allocation2 + $0x50] sm:$0xff]  ;;  %v950_v35 = vld [vmem:[#allocation2] sm:$0xff]  ;;  %v997_v37 = vld [vmem:[#allocation3 + $0x28] sm:$0xff] }
 0x138   : > { %v999_v34 = vld [vmem:[#allocation3 + $0x10] sm:$0xff] }
 0x139   : > { %v949_v14 = vld [vmem:[#allocation2 + $0x30] sm:$0xff] }
 0x13c   : > { %993 = vadd.xlane.f32.xlu0 %v963_v11 }
 0x13d   : > { %991 = vadd.xlane.f32.xlu1 %v962_v12 }
 0x13f   : > { %1037 = vmax.xlane.f32.xlu2 %v1009_v15 }
 0x144   : > { %1039 = vmax.xlane.f32.xlu0 %v1010_v5 }
 0x145   : > { %987 = vadd.xlane.f32.xlu1 %v960_v13 }
 0x147   : > { %983 = vadd.xlane.f32.xlu2 %v958_v18 }
 0x14c   : > { %985 = vadd.xlane.f32.xlu0 %v959_v17 }
 0x14d   : > { %1035 = vmax.xlane.f32.xlu1 %v1008_v16 }
 0x14f   : > { %1031 = vmax.xlane.f32.xlu2 %v1006_v21 }
 0x154   : > { %1033 = vmax.xlane.f32.xlu0 %v1007_v19 }
 0x155   : > { %981 = vadd.xlane.f32.xlu1 %v957_v20 }
 0x157   : > { %977 = vadd.xlane.f32.xlu2 %v955_v24 }
 0x15c   : > { %979 = vadd.xlane.f32.xlu0 %v956_v23 }
 0x15d   : > { %1029 = vmax.xlane.f32.xlu1 %v1005_v22 }
 0x15f   : > { %1025 = vmax.xlane.f32.xlu2 %v1003_v27 }
 0x164   : > { %1027 = vmax.xlane.f32.xlu0 %v1004_v25 }
 0x165   : > { %975 = vadd.xlane.f32.xlu1 %v954_v26 }
 0x167   : > { %971 = vadd.xlane.f32.xlu2 %v952_v30 }
 0x16c   : > { %973 = vadd.xlane.f32.xlu0 %v953_v28 }
 0x16d   : > { %1023 = vmax.xlane.f32.xlu1 %v1002_v7 }
 0x16f   : > { %1019 = vmax.xlane.f32.xlu2 %v1000_v33 }
 0x174   : > { %1021 = vmax.xlane.f32.xlu0 %v1001_v31 }
 0x175   : > { %969 = vadd.xlane.f32.xlu1 %v951_v32 }
 0x177   : > { %965 = vadd.xlane.f32.xlu2 %v949_v14 }
 0x17c   : > { %967 = vadd.xlane.f32.xlu0 %v950_v35 }
 0x17d   : > { %1017 = vmax.xlane.f32.xlu1 %v999_v34 }
 0x184   : > { %1015 = vmax.xlane.f32.xlu0 %v998_v36 }
 0x185   : > { %1013 = vmax.xlane.f32.xlu1 %v997_v37 }
 0x1a2   : > { %v1042_v41 = vpop.xlane.xlu2 %1041 }
 0x1a7   : > { %v996_v39 = vpop.xlane.xlu0 %995 }
 0x1a8   : > { %v1044_v38 = vpop.xlane.xlu1 %1043  ;;  %v2586_v40 = vmul.f32 0.0030864198, %v996_v39 }
 0x1aa   : > { %v1077_v42 = vsel %vm1061_vm2, %v2586_v40, %v1044_v38  ;;  %v990_v46 = vpop.xlane.xlu2 %989  ;;  %v1078_v38 = vld [vmem:[%s3040_s5] sm:$0xff] }
 0x1ab   : > { %1079 = vmatpush.msra.mxu0 %v1077_v42  ;;  %v2594_v48 = vmul.f32 0.0030864198, %v990_v46  ;;  %v1100_v42 = vld [vmem:[%s3059_s6] sm:$0xff]  ;;  %v1101_v46 = vld [vmem:[%s3059_s6 + $0x8] sm:$0xff] }
 0x1af   : > { %v994_v43 = vpop.xlane.xlu0 %993 }
 0x1b0   : > { %v992_v44 = vpop.xlane.xlu1 %991  ;;  %v2590_v45 = vmul.f32 0.0030864198, %v994_v43  ;;  %v1106_v43 = vld [vmem:[%s3059_s6 + $0x30] sm:$0xff] }
 0x1b1   : > { %v2596_v49 = vmul.f32 0.0030864198, %v992_v44  ;;  %v1112_v44 = vld [vmem:[%s3059_s6 + $0x60] sm:$0xff] }
 0x1b2   : > { %v1076_v47 = vsel %vm1061_vm2, %v2590_v45, %v1042_v41  ;;  %v1038_v52 = vpop.xlane.xlu2 %1037 }
 0x1b3   : > { %1080 = vmatpush.msra.mxu0 %v1076_v47  ;;  %v1074_v53 = vsel %vm1061_vm2, %v2594_v48, %v1038_v52  ;;  %v1107_v47 = vld [vmem:[%s3059_s6 + $0x38] sm:$0xff]  ;;  %v1114_v52 = vld [vmem:[%s3059_s6 + $0x70] sm:$0xff] }
 0x1b7   : > { %v1040_v50 = vpop.xlane.xlu0 %1039 }
 0x1b8   : > { %v988_v59 = vpop.xlane.xlu1 %987  ;;  %v1075_v51 = vsel %vm1061_vm2, %v2596_v49, %v1040_v50  ;;  %v1113_v50 = vld [vmem:[%s3059_s6 + $0x68] sm:$0xff] }
 0x1b9   : > { %1081 = vmatpush.msra.mxu0 %v1075_v51  ;;  %v2602_v54 = vmul.f32 0.0030864198, %v988_v59  ;;  %v1102_v59 = vld [vmem:[%s3059_s6 + $0x10] sm:$0xff]  ;;  %v1108_v51 = vld [vmem:[%s3059_s6 + $0x40] sm:$0xff] }
 0x1ba   : > { %v984_v57 = vpop.xlane.xlu2 %983 }
 0x1bb   : > { %1082 = vmatpush.msra.mxu0 %v1074_v53  ;;  %v2606_v58 = vmul.f32 0.0030864198, %v984_v57  ;;  %v1103_v53 = vld [vmem:[%s3059_s6 + $0x18] sm:$0xff]  ;;  %v1110_v57 = vld [vmem:[%s3059_s6 + $0x50] sm:$0xff] }
 0x1bf   : > { %v986_v56 = vpop.xlane.xlu0 %985 }
 0x1c0   : > { %v1036_v55 = vpop.xlane.xlu1 %1035  ;;  %v2608_v60 = vmul.f32 0.0030864198, %v986_v56  ;;  %v1115_v56 = vld [vmem:[%s3059_s6 + $0x78] sm:$0xff] }
 0x1c1   : > { %v1073_v29 = vsel %vm1061_vm2, %v2602_v54, %v1036_v55  ;;  %v1109_v55 = vld [vmem:[%s3059_s6 + $0x48] sm:$0xff] }
 0x1c2   : > { %1083 = vmatpush.msra.mxu0 %v1073_v29  ;;  %v1032_v2 = vpop.xlane.xlu2 %1031  ;;  %v1104_v29 = vld [vmem:[%s3059_s6 + $0x20] sm:$0xff] }
 0x1c3   : > { %v1071_v61 = vsel %vm1061_vm2, %v2606_v58, %v1032_v2 }
 0x1c7   : > { %v1034_v62 = vpop.xlane.xlu0 %1033 }
 0x1c8   : > { %v982_v0 = vpop.xlane.xlu1 %981  ;;  %v1072_v1 = vsel %vm1061_vm2, %v2608_v60, %v1034_v62  ;;  %v1105_v62 = vld [vmem:[%s3059_s6 + $0x28] sm:$0xff] }
 0x1c9   : > { %1084 = vmatpush.msra.mxu0 %v1072_v1  ;;  %v2614_v3 = vmul.f32 0.0030864198, %v982_v0  ;;  %v1111_v0 = vld [vmem:[%s3059_s6 + $0x58] sm:$0xff] }
 0x1ca   : > { %v978_v9 = vpop.xlane.xlu2 %977 }
 0x1cb   : > { %1085 = vmatpush.msra.mxu0 %v1071_v61  ;;  %v2618_v10 = vmul.f32 0.0030864198, %v978_v9 }
 0x1cf   : > { %v980_v6 = vpop.xlane.xlu0 %979 }
 0x1d0   : > { %v1030_v4 = vpop.xlane.xlu1 %1029  ;;  %v2620_v11 = vmul.f32 0.0030864198, %v980_v6 }
 0x1d1   : > { %v1070_v8 = vsel %vm1061_vm2, %v2614_v3, %v1030_v4 }
 0x1d2   : > { %1086 = vmatpush.msra.mxu0 %v1070_v8  ;;  %v1026_v13 = vpop.xlane.xlu2 %1025 }
 0x1d3   : > { %v1068_v15 = vsel %vm1061_vm2, %v2618_v10, %v1026_v13 }
 0x1d7   : > { %v1028_v12 = vpop.xlane.xlu0 %1027 }
 0x1d8   : > { %v976_v63 = vpop.xlane.xlu1 %975  ;;  %v1069_v5 = vsel %vm1061_vm2, %v2620_v11, %v1028_v12 }
 0x1d9   : > { %1087 = vmatpush.msra.mxu0 %v1069_v5  ;;  %v2626_v16 = vmul.f32 0.0030864198, %v976_v63 }
 0x1da   : > { %v972_v20 = vpop.xlane.xlu2 %971 }
 0x1db   : > { %1088 = vmatpush.msra.mxu0 %v1068_v15  ;;  %v2630_v21 = vmul.f32 0.0030864198, %v972_v20 }
 0x1df   : > { %v974_v18 = vpop.xlane.xlu0 %973 }
 0x1e0   : > { %v1024_v17 = vpop.xlane.xlu1 %1023  ;;  %v2632_v22 = vmul.f32 0.0030864198, %v974_v18 }
 0x1e1   : > { %v1067_v19 = vsel %vm1061_vm2, %v2626_v16, %v1024_v17 }
 0x1e2   : > { %1089 = vmatpush.msra.mxu0 %v1067_v19  ;;  %v1020_v26 = vpop.xlane.xlu2 %1019 }
 0x1e3   : > { %v1065_v27 = vsel %vm1061_vm2, %v2630_v21, %v1020_v26 }
 0x1e7   : > { %v1022_v23 = vpop.xlane.xlu0 %1021 }
 0x1e8   : > { %v970_v24 = vpop.xlane.xlu1 %969  ;;  %v1066_v25 = vsel %vm1061_vm2, %v2632_v22, %v1022_v23 }
 0x1e9   : > { %1090 = vmatpush.msra.mxu0 %v1066_v25  ;;  %v2638_v7 = vmul.f32 0.0030864198, %v970_v24 }
 0x1ea   : > { %v966_v32 = vpop.xlane.xlu2 %965 }
 0x1eb   : > { %1091 = vmatpush.msra.mxu0 %v1065_v27  ;;  %v2642_v33 = vmul.f32 0.0030864198, %v966_v32 }
 0x1ef   : > { %v968_v30 = vpop.xlane.xlu0 %967 }
 0x1f0   : > { %v1018_v28 = vpop.xlane.xlu1 %1017  ;;  %v2644_v34 = vmul.f32 0.0030864198, %v968_v30 }
 0x1f1   : > { %v1064_v31 = vsel %vm1061_vm2, %v2638_v7, %v1018_v28 }
 0x1f2   : > { %1092 = vmatpush.msra.mxu0 %v1064_v31 }
 0x1f7   : > { %v1016_v35 = vpop.xlane.xlu0 %1015 }
 0x1f8   : > { %v1014_v14 = vpop.xlane.xlu1 %1013  ;;  %v1063_v36 = vsel %vm1061_vm2, %v2644_v34, %v1016_v35 }
 0x1f9   : > { %v1062_v37 = vsel %vm1061_vm2, %v2642_v33, %v1014_v14  ;;  %1093 = vmatpush.msra.mxu0 %v1063_v36 }
 0x1fb   : > { %1094 = vmatpush.msra.mxu0 %v1062_v37 }
 0x1fc   : > { %1095 = vmatmul.f32.vlgmr.msra.gmra.mxu0 %v1078_v38 }
 0x279   : > { %v1096_v39 = vpop.f32.mrf.mxu0 }
 0x27a   : > { %v1099_v41 = vmax.f32 %v1096_v39, 0.0 }
 0x27c   : > { %1180 = vmatpush.msra.mxu1 %v1099_v41  ;;  %1922 = vmatpush.msra.mxu2 %v1099_v41 }
 0x27d   : > { %1923 = vmatpush.msra.mxu3 %v1099_v41  ;;  %1863 = vmatmul.msk.f32.vlgmr.msra.gmra.mxu1 %vm1116_vm3, %v1100_v42 }
 0x27e   : > { %1869 = vmatmul.msk.f32.vlgmr.msra.gmra.mxu2 %vm1116_vm3, %v1106_v43  ;;  %1875 = vmatmul.msk.f32.vlgmr.msra.gmra.mxu3 %vm1116_vm3, %v1112_v44 }
 0x285   : > { %1864 = vmatmul.msk.f32.gmra.mxu1 %vm1116_vm3, %v1101_v46 }
 0x286   : > { %1870 = vmatmul.msk.f32.gmra.mxu2 %vm1116_vm3, %v1107_v47  ;;  %1876 = vmatmul.msk.f32.gmra.mxu3 %vm1116_vm3, %v1113_v50 }
 0x28d   : > { %1865 = vmatmul.msk.f32.gmra.mxu1 %vm1116_vm3, %v1102_v59 }
 0x28e   : > { %1871 = vmatmul.msk.f32.gmra.mxu2 %vm1116_vm3, %v1108_v51  ;;  %1877 = vmatmul.msk.f32.gmra.mxu3 %vm1116_vm3, %v1114_v52 }
 0x295   : > { %1866 = vmatmul.msk.f32.gmra.mxu1 %vm1116_vm3, %v1103_v53 }
 0x296   : > { %1872 = vmatmul.msk.f32.gmra.mxu2 %vm1116_vm3, %v1109_v55  ;;  %1878 = vmatmul.msk.f32.gmra.mxu3 %vm1116_vm3, %v1115_v56 }
 0x29d   : > { %1867 = vmatmul.msk.f32.gmra.mxu1 %vm1116_vm3, %v1104_v29 }
 0x29e   : > { %1873 = vmatmul.msk.f32.gmra.mxu2 %vm1116_vm3, %v1110_v57 }
 0x2a5   : > { %1868 = vmatmul.msk.f32.gmra.mxu1 %vm1116_vm3, %v1105_v62 }
 0x2a6   : > { %1874 = vmatmul.msk.f32.gmra.mxu2 %vm1116_vm3, %v1111_v0 }
 0x2fa   : > { %v1182_v1 = vpop.f32.mrf.mxu1 }
 0x2fb   : > { %1246 = vrot.lane.b32.xlu2 %v1182_v1, %s2214_s18 }
 0x301   : > { %v1200_v2 = vpop.f32.mrf.mxu2  ;;  %v2718_v61 = vpop.f32.mrf.mxu3 }
 0x302   : > { %1258 = vrot.lane.b32.xlu1 %v1200_v2, %s2214_s18  ;;  %v1185_v4 = vpop.f32.mrf.mxu1 }
 0x303   : > { %1248 = vrot.lane.b32.xlu0 %v1185_v4, %s2214_s18 }
 0x309   : > { %v2722_v6 = vpop.f32.mrf.mxu2  ;;  %v2730_v9 = vpop.f32.mrf.mxu3 }
 0x30a   : > { %1270 = vrot.lane.b32.xlu1 %v2718_v61, %s2214_s18  ;;  %v2726_v8 = vpop.f32.mrf.mxu1 }
 0x30b   : > { %1260 = vrot.lane.b32.xlu0 %v2722_v6, %s2214_s18 }
 0x311   : > { %v1206_v12 = vpop.f32.mrf.mxu2  ;;  %v2735_v5 = vpop.f32.mrf.mxu3 }
 0x312   : > { %1262 = vrot.lane.b32.xlu2 %v1206_v12, %s2214_s18  ;;  %1250 = vrot.lane.b32.xlu1 %v2726_v8, %s2214_s18  ;;  %v1191_v63 = vpop.f32.mrf.mxu1 }
 0x319   : > { %v2737_v13 = vpop.f32.mrf.mxu2  ;;  %v2746_v17 = vpop.f32.mrf.mxu3 }
 0x31a   : > { %1264 = vrot.lane.b32.xlu1 %v2737_v13, %s2214_s18  ;;  %1252 = vrot.lane.b32.xlu2 %v1191_v63, %s2214_s18  ;;  %v2742_v15 = vpop.f32.mrf.mxu1 }
 0x31b   : > { %1254 = vrot.lane.b32.xlu0 %v2742_v15, %s2214_s18 }
 0x321   : > { %v2748_v18 = vpop.f32.mrf.mxu2 }
 0x322   : > { %1276 = vrot.lane.b32.xlu1 %v2746_v17, %s2214_s18  ;;  %v1197_v19 = vpop.f32.mrf.mxu1 }
 0x323   : > { %1266 = vrot.lane.b32.xlu0 %v2748_v18, %s2214_s18  ;;  %1256 = vrot.lane.b32.xlu2 %v1197_v19, %s2214_s18 }
 0x329   : > { %v2755_v20 = vpop.f32.mrf.mxu2 }
 0x32b   : > { %1272 = vrot.lane.b32.xlu0 %v2730_v9, %s2214_s18  ;;  %1268 = vrot.lane.b32.xlu2 %v2755_v20, %s2214_s18 }
 0x333   : > { %1274 = vrot.lane.b32.xlu2 %v2735_v5, %s2214_s18 }
 0x355   : > { %v1247_v23 = vpop.permute.xlu2 %1246 }
 0x356   : > { %v1294_v24 = vadd.f32 %v1247_v23, %v1182_v1 }
 0x358   : > { %v1879_v25 = vmul.f32 -1.442695, %v1294_v24 }
 0x35a   : > { %2012 = vpow2.f32 %v1879_v25 }
 0x360   : > { %v2013_v26 = vpop.eup %2012 }
 0x361   : > { %v1358_v27 = vadd.f32 1.0, %v2013_v26 }
 0x363   : > { %2014 = vrcp.f32 %v1358_v27  ;;  %v1385_v35 = vand.u32 2147483648, %v1358_v27  ;;  %v1383_v37 = vand.u32 2147483647, %v1358_v27  ;;  %vm1379_vm5 = vweird.f32 %v1358_v27 }
 0x365   : > { %v1386_v41 = vor.u32 1.1754944e-38, %v1385_v35  ;;  %vm1384_vm7 = vcmp.eq.f32.partialorder %v1383_v37, 8.507059e+37 }
 0x369   : > { %v2015_v28 = vpop.eup %2014 }
 0x36a   : > { %v1375_v30 = vmul.f32 %v2015_v28, %v1358_v27  ;;  %vm1380_vm4 = vweird.f32 %v2015_v28 }
 0x36b   : > { %vm1381_vm6 = vmor %vm1379_vm5, %vm1380_vm4 }
 0x36c   : > { %v1376_v31 = vsub.f32 1.0, %v1375_v30  ;;  %v1263_v32 = vpop.permute.xlu2 %1262 }
 0x36d   : > { %v1302_v14 = vadd.f32 %v1263_v32, %v1206_v12 }
 0x36e   : > { %v1377_v36 = vmul.f32 %v2015_v28, %v1376_v31 }
 0x36f   : > { %v1887_v38 = vmul.f32 -1.442695, %v1302_v14 }
 0x370   : > { %v1378_v39 = vadd.f32 %v2015_v28, %v1377_v36 }
 0x371   : > { %2016 = vpow2.f32 %v1887_v38 }
 0x372   : > { %v1382_v42 = vsel %vm1381_vm6, %v2015_v28, %v1378_v39 }
 0x373   : > { %v1387_v43 = vsel %vm1384_vm7, %v1386_v41, %v1382_v42 }
 0x374   : > { %v1614_v44 = vadd.f32 1.0, %v1387_v43  ;;  %v1259_v46 = vpop.permute.xlu1 %1258  ;;  %v1253_v47 = vpop.permute.xlu2 %1252 }
 0x375   : > { %v1300_v50 = vadd.f32 %v1259_v46, %v1200_v2  ;;  %v1297_v59 = vadd.f32 %v1253_v47, %v1191_v63  ;;  %v1249_v51 = vpop.permute.xlu0 %1248 }
 0x376   : > { %v1630_v52 = vmul.f32 %v1614_v44, %v2642_v33  ;;  %v1295_v53 = vadd.f32 %v1249_v51, %v1185_v4 }
 0x377   : > { %v2017_v55 = vpop.eup %2016  ;;  %v1885_v56 = vmul.f32 -1.442695, %v1300_v50  ;;  %v1882_v29 = vmul.f32 -1.442695, %v1297_v59 }
 0x378   : > { %1646 = vst.msk [vmem:[%s2368_s16] sm:$0xff] %vm1061_vm2, %v1630_v52  ;;  %v1366_v57 = vadd.f32 1.0, %v2017_v55  ;;  %v1880_v62 = vmul.f32 -1.442695, %v1295_v53 }
 0x379   : > { %2018 = vpow2.f32 %v1885_v56 }
 0x37a   : > { %2020 = vrcp.f32 %v1366_v57  ;;  %v1503_v32 = vand.u32 2147483647, %v1366_v57  ;;  %vm1499_vm9 = vweird.f32 %v1366_v57 }
 0x37b   : > { %2022 = vpow2.f32 %v1882_v29 }
 0x37c   : > { %2024 = vpow2.f32 %v1880_v62  ;;  %v1271_v0 = vpop.permute.xlu1 %1270  ;;  %vm1504_vm10 = vcmp.eq.f32.partialorder %v1503_v32, 8.507059e+37 }
 0x37d   : > { %v1306_v1 = vadd.f32 %v1271_v0, %v2718_v61  ;;  %v1261_v2 = vpop.permute.xlu0 %1260  ;;  %v1257_v12 = vpop.permute.xlu2 %1256 }
 0x37e   : > { %v1301_v63 = vadd.f32 %v1261_v2, %v2722_v6  ;;  %v1299_v33 = vadd.f32 %v1257_v12, %v1197_v19  ;;  %v1505_v6 = vand.u32 2147483648, %v1366_v57 }
 0x37f   : > { %v2019_v4 = vpop.eup %2018  ;;  %v1891_v23 = vmul.f32 -1.442695, %v1306_v1 }
 0x380   : > { %v2021_v24 = vpop.eup %2020  ;;  %v2768_v25 = vadd.f32 1.0, %v2019_v4  ;;  %v1886_v26 = vmul.f32 -1.442695, %v1301_v63  ;;  %v1884_v27 = vmul.f32 -1.442695, %v1299_v33  ;;  %v1506_v44 = vor.u32 1.1754944e-38, %v1505_v6 }
 0x381   : > { %v2023_v28 = vpop.eup %2022  ;;  %v1495_v30 = vmul.f32 %v2021_v24, %v1366_v57  ;;  %2026 = vpow2.f32 %v1891_v23  ;;  %vm1500_vm8 = vweird.f32 %v2021_v24 }
 0x382   : > { %v2025_v31 = vpop.eup %2024  ;;  %2028 = vrcp.f32 %v2768_v25  ;;  %v2771_v35 = vadd.f32 1.0, %v2023_v28  ;;  %v1473_v37 = vand.u32 2147483647, %v2768_v25  ;;  %v1475_v38 = vand.u32 2147483648, %v2768_v25  ;;  %vm1501_vm11 = vmor %vm1499_vm9, %vm1500_vm8 }
 0x383   : > { %v1496_v61 = vsub.f32 1.0, %v1495_v30  ;;  %v2773_v14 = vadd.f32 1.0, %v2025_v31  ;;  %2030 = vpow2.f32 %v1886_v26  ;;  %vm1469_vm12 = vweird.f32 %v2768_v25 }
 0x384   : > { %2032 = vpow2.f32 %v1884_v27  ;;  %v1251_v19 = vpop.permute.xlu1 %1250  ;;  %v1430_v42 = vand.u32 2147483648, %v2771_v35  ;;  %v1428_v46 = vand.u32 2147483647, %v2771_v35  ;;  %vm2786_vm13 = vcmp.eq.f32.partialorder %v1473_v37, 8.507059e+37 }
 0x385   : > { %v1497_v36 = vmul.f32 %v2021_v24, %v1496_v61  ;;  %2034 = vrcp.f32 %v2771_v35  ;;  %v1476_v53 = vor.u32 1.1754944e-38, %v1475_v38  ;;  %v1398_v55 = vand.u32 2147483647, %v2773_v14  ;;  %v1269_v33 = vpop.permute.xlu2 %1268 }
 0x386   : > { %2036 = vrcp.f32 %v2773_v14  ;;  %vm1424_vm14 = vweird.f32 %v2771_v35  ;;  %v1400_v57 = vand.u32 2147483648, %v2773_v14  ;;  %v1296_v62 = vadd.f32 %v1251_v19, %v2726_v8 }
 0x387   : > { %v2027_v39 = vpop.eup %2026  ;;  %v1498_v41 = vadd.f32 %v2021_v24, %v1497_v36  ;;  %v1431_v12 = vor.u32 1.1754944e-38, %v1430_v42  ;;  %vm1394_vm15 = vweird.f32 %v2773_v14  ;;  %vm2799_vm1 = vcmp.eq.f32.partialorder %v1428_v46, 8.507059e+37 }
 0x388   : > { %v2029_v43 = vpop.eup %2028  ;;  %v2783_v47 = vadd.f32 1.0, %v2027_v39  ;;  %vm2809_vm3 = vcmp.eq.f32.partialorder %v1398_v55, 8.507059e+37  ;;  %v1305_v6 = vadd.f32 %v1269_v33, %v2755_v20  ;;  %v1401_v38 = vor.u32 1.1754944e-38, %v1400_v57 }
 0x389   : > { %v2031_v50 = vpop.eup %2030  ;;  %v1502_v59 = vsel %vm1501_vm11, %v2021_v24, %v1498_v41  ;;  %v1465_v51 = vmul.f32 %v2029_v43, %v2768_v25  ;;  %vm1470_vm0 = vweird.f32 %v2029_v43  ;;  %v1881_v52 = vmul.f32 -1.442695, %v1296_v62 }
 0x38a   : > { %v2033_v56 = vpop.eup %2032  ;;  %v1507_v29 = vsel %vm1504_vm10, %v1506_v44, %v1502_v59  ;;  %2038 = vrcp.f32 %v2783_v47  ;;  %v2796_v63 = vadd.f32 1.0, %v2031_v50  ;;  %v1563_v8 = vand.u32 2147483647, %v2783_v47  ;;  %vm1471_vm5 = vmor %vm1469_vm12, %vm1470_vm0 }
 0x38b   : > { %v2035_v0 = vpop.eup %2034  ;;  %v1622_v1 = vadd.f32 1.0, %v1507_v29  ;;  %v1466_v2 = vsub.f32 1.0, %v1465_v51  ;;  %v2804_v26 = vadd.f32 1.0, %v2033_v56  ;;  %v1565_v31 = vand.u32 2147483648, %v2783_v47 }
 0x38c   : > { %v2037_v4 = vpop.eup %2036  ;;  %v1420_v23 = vmul.f32 %v2035_v0, %v2771_v35  ;;  %2040 = vrcp.f32 %v2796_v63  ;;  %v2815_v19 = vpop.permute.xlu1 %1264  ;;  %vm1559_vm4 = vweird.f32 %v2783_v47  ;;  %vm1425_vm6 = vweird.f32 %v2035_v0 }
 0x38d   : > { %v1638_v27 = vmul.f32 %v1622_v1, %v2614_v3  ;;  %v1467_v28 = vmul.f32 %v2029_v43, %v1466_v2  ;;  %v1390_v30 = vmul.f32 %v2037_v4, %v2773_v14  ;;  %v2817_v36 = vpop.permute.xlu0 %1254  ;;  %vm1395_vm7 = vweird.f32 %v2037_v4  ;;  %vm1426_vm9 = vmor %vm1424_vm14, %vm1425_vm6 }
 0x38e   : > { %v1421_v32 = vsub.f32 1.0, %v1420_v23  ;;  %2042 = vrcp.f32 %v2804_v26  ;;  %vm2827_vm8 = vcmp.eq.f32.partialorder %v1563_v8, 8.507059e+37  ;;  %v1566_v50 = vor.u32 1.1754944e-38, %v1565_v31  ;;  %vm1396_vm10 = vmor %vm1394_vm15, %vm1395_vm7 }
 0x38f   : > { %1654 = vst.msk [vmem:[%s2368_s16 + $0x40] sm:$0xff] %vm1061_vm2, %v1638_v27  ;;  %v1468_v3 = vadd.f32 %v2029_v43, %v1467_v28  ;;  %v1391_v37 = vsub.f32 1.0, %v1390_v30  ;;  %v1488_v25 = vand.u32 2147483647, %v2796_v63  ;;  %v1490_v55 = vand.u32 2147483648, %v2796_v63  ;;  %v1275_v30 = vpop.permute.xlu2 %1274 }
 0x390   : > { %v2039_v39 = vpop.eup %2038  ;;  %v1422_v41 = vmul.f32 %v2035_v0, %v1421_v32  ;;  %v1458_v57 = vand.u32 2147483647, %v2804_v26  ;;  %vm1484_vm12 = vweird.f32 %v2796_v63  ;;  %2044 = vpow2.f32 %v1881_v52 }
 0x391   : > { %v1472_v20 = vsel %vm1471_vm5, %v2029_v43, %v1468_v3  ;;  %v1392_v42 = vmul.f32 %v2037_v4, %v1391_v37  ;;  %v1555_v44 = vmul.f32 %v2039_v39, %v2783_v47  ;;  %vm1560_vm11 = vweird.f32 %v2039_v39 }
 0x392   : > { %v1477_v59 = vsel %vm2786_vm13, %v1476_v53, %v1472_v20  ;;  %v1423_v51 = vadd.f32 %v2035_v0, %v1422_v41  ;;  %v2838_v1 = vpop.eup %2040  ;;  %v1890_v53 = vmul.f32 -1.442695, %v1305_v6  ;;  %vm1454_vm13 = vweird.f32 %v2804_v26  ;;  %vm1561_vm0 = vmor %vm1559_vm4, %vm1560_vm11 }
 0x393   : > { %v1620_v56 = vadd.f32 1.0, %v1477_v59  ;;  %v1393_v43 = vadd.f32 %v2037_v4, %v1392_v42  ;;  %v1556_v29 = vsub.f32 1.0, %v1555_v44  ;;  %v1480_v28 = vmul.f32 %v2838_v1, %v2796_v63 }
 0x394   : > { %v1427_v2 = vsel %vm1426_vm9, %v2035_v0, %v1423_v51  ;;  %v2043_v0 = vpop.eup %2042  ;;  %vm2852_vm14 = vcmp.eq.f32.partialorder %v1488_v25, 8.507059e+37  ;;  %vm1485_vm15 = vweird.f32 %v2838_v1  ;;  %v1277_v61 = vpop.permute.xlu1 %1276  ;;  %2046 = vpow2.f32 %v1890_v53 }
 0x395   : > { %v1636_v35 = vmul.f32 %v1620_v56, %v2618_v10  ;;  %v1432_v33 = vsel %vm2799_vm1, %v1431_v12, %v1427_v2  ;;  %v1397_v23 = vsel %vm1396_vm10, %v2037_v4, %v1393_v43  ;;  %v1557_v8 = vmul.f32 %v2039_v39, %v1556_v29  ;;  %v1267_v6 = vpop.permute.xlu0 %1266 }
 0x396   : > { %v1617_v27 = vadd.f32 1.0, %v1432_v33  ;;  %v1402_v14 = vsel %vm2809_vm3, %v1401_v38, %v1397_v23  ;;  %v1460_v10 = vand.u32 2147483648, %v2804_v26  ;;  %v1450_v24 = vmul.f32 %v2043_v0, %v2804_v26  ;;  %vm1486_vm3 = vmor %vm1484_vm12, %vm1485_vm15 }
 0x397   : > { %1652 = vst.msk [vmem:[%s2368_s16 + $0x30] sm:$0xff] %vm1061_vm2, %v1636_v35  ;;  %v1615_v12 = vadd.f32 1.0, %v1402_v14  ;;  %v1558_v4 = vadd.f32 %v2039_v39, %v1557_v8  ;;  %v1481_v32 = vsub.f32 1.0, %v1480_v28  ;;  %vm1455_vm1 = vweird.f32 %v2043_v0 }
 0x398   : > { %v1633_v31 = vmul.f32 %v1617_v27, %v2630_v21  ;;  %v1451_v38 = vsub.f32 1.0, %v1450_v24  ;;  %v1303_v47 = vadd.f32 %v2815_v19, %v2737_v13  ;;  %v1298_v20 = vadd.f32 %v2817_v36, %v2742_v15  ;;  %v2045_v19 = vpop.eup %2044  ;;  %vm1456_vm5 = vmor %vm1454_vm13, %vm1455_vm1 }
 0x399   : > { %v1631_v3 = vmul.f32 %v1615_v12, %v2644_v34  ;;  %v1562_v37 = vsel %vm1561_vm0, %v2039_v39, %v1558_v4  ;;  %v1482_v41 = vmul.f32 %v2838_v1, %v1481_v32  ;;  %v1308_v39 = vadd.f32 %v1275_v30, %v2735_v5 }
 0x39a   : > { %1649 = vst.msk [vmem:[%s2368_s16 + $0x18] sm:$0xff] %vm1061_vm2, %v1633_v31  ;;  %v1567_v21 = vsel %vm2827_vm8, %v1566_v50, %v1562_v37  ;;  %v1452_v34 = vmul.f32 %v2043_v0, %v1451_v38  ;;  %v1309_v44 = vadd.f32 %v1277_v61, %v2746_v17  ;;  %v1491_v46 = vor.u32 1.1754944e-38, %v1490_v55  ;;  %v2047_v55 = vpop.eup %2046 }
 0x39b   : > { %1647 = vst.msk [vmem:[%s2368_s16 + $0x8] sm:$0xff] %vm1061_vm2, %v1631_v3  ;;  %v1626_v42 = vadd.f32 1.0, %v1567_v21  ;;  %v1483_v59 = vadd.f32 %v2838_v1, %v1482_v41  ;;  %v1888_v50 = vmul.f32 -1.442695, %v1303_v47  ;;  %v1883_v51 = vmul.f32 -1.442695, %v1298_v20 }
 0x39c   : > { %v1453_v13 = vadd.f32 %v2043_v0, %v1452_v34  ;;  %vm1459_vm4 = vcmp.eq.f32.partialorder %v1458_v57, 8.507059e+37  ;;  %v1893_v15 = vmul.f32 -1.442695, %v1308_v39  ;;  %v1461_v17 = vor.u32 1.1754944e-38, %v1460_v10 }
 0x39d   : > { %v1642_v25 = vmul.f32 %v1626_v42, %v2594_v48  ;;  %v1487_v5 = vsel %vm1486_vm3, %v2838_v1, %v1483_v59  ;;  %2048 = vpow2.f32 %v1888_v50  ;;  %v1894_v36 = vmul.f32 -1.442695, %v1309_v44  ;;  %v1273_v52 = vpop.permute.xlu0 %1272 }
 0x39e   : > { %v1492_v48 = vsel %vm2852_vm14, %v1491_v46, %v1487_v5  ;;  %v1457_v63 = vsel %vm1456_vm5, %v2043_v0, %v1453_v13  ;;  %v2893_v56 = vadd.f32 1.0, %v2045_v19  ;;  %2050 = vpow2.f32 %v1883_v51 }
 0x39f   : > { %1658 = vst.msk [vmem:[%s2368_s16 + $0x60] sm:$0xff] %vm1061_vm2, %v1642_v25  ;;  %v1621_v43 = vadd.f32 1.0, %v1492_v48  ;;  %v1462_v29 = vsel %vm1459_vm4, %v1461_v17, %v1457_v63  ;;  %v2895_v57 = vadd.f32 1.0, %v2047_v55  ;;  %2052 = vpow2.f32 %v1893_v15 }
 0x3a0   : > { %v1619_v26 = vadd.f32 1.0, %v1462_v29  ;;  %2054 = vrcp.f32 %v2893_v56  ;;  %v1304_v2 = vadd.f32 %v1267_v6, %v2748_v18  ;;  %v1413_v33 = vand.u32 2147483647, %v2893_v56 }
 0x3a1   : > { %v1637_v1 = vmul.f32 %v1621_v43, %v2620_v11  ;;  %2056 = vrcp.f32 %v2895_v57  ;;  %v1415_v23 = vand.u32 2147483648, %v2893_v56  ;;  %v1548_v11 = vand.u32 2147483647, %v2895_v57 }
 0x3a2   : > { %v1635_v53 = vmul.f32 %v1619_v26, %v2626_v16  ;;  %2058 = vpow2.f32 %v1894_v36  ;;  %v1550_v0 = vand.u32 2147483648, %v2895_v57  ;;  %v1307_v18 = vadd.f32 %v1273_v52, %v2730_v9 }
 0x3a3   : > { %v2049_v35 = vpop.eup %2048  ;;  %1653 = vst.msk [vmem:[%s2368_s16 + $0x38] sm:$0xff] %vm1061_vm2, %v1637_v1  ;;  %v1889_v28 = vmul.f32 -1.442695, %v1304_v2  ;;  %vm1409_vm6 = vweird.f32 %v2893_v56  ;;  %vm1544_vm7 = vweird.f32 %v2895_v57  ;;  %vm2919_vm8 = vcmp.eq.f32.partialorder %v1413_v33, 8.507059e+37 }
 0x3a4   : > { %v2051_v8 = vpop.eup %2050  ;;  %1651 = vst.msk [vmem:[%s2368_s16 + $0x28] sm:$0xff] %vm1061_vm2, %v1635_v53  ;;  %v2910_v27 = vadd.f32 1.0, %v2049_v35  ;;  %v1416_v24 = vor.u32 1.1754944e-38, %v1415_v23  ;;  %vm2925_vm9 = vcmp.eq.f32.partialorder %v1548_v11, 8.507059e+37  ;;  %v1551_v31 = vor.u32 1.1754944e-38, %v1550_v0 }
 0x3a5   : > { %v2053_v16 = vpop.eup %2052  ;;  %v2913_v14 = vadd.f32 1.0, %v2051_v8  ;;  %v1892_v32 = vmul.f32 -1.442695, %v1307_v18 }
 0x3a6   : > { %v2055_v62 = vpop.eup %2054  ;;  %2060 = vrcp.f32 %v2910_v27  ;;  %v1518_v3 = vand.u32 2147483647, %v2910_v27  ;;  %v2930_v37 = vadd.f32 1.0, %v2053_v16  ;;  %v1520_v21 = vand.u32 2147483648, %v2910_v27 }
 0x3a7   : > { %v2057_v10 = vpop.eup %2056  ;;  %v1405_v12 = vmul.f32 %v2055_v62, %v2893_v56  ;;  %2062 = vrcp.f32 %v2913_v14  ;;  %vm1410_vm10 = vweird.f32 %v2055_v62  ;;  %v1443_v20 = vand.u32 2147483647, %v2913_v14 }
 0x3a8   : > { %v1540_v9 = vmul.f32 %v2057_v10, %v2895_v57  ;;  %v2059_v61 = vpop.eup %2058  ;;  %2064 = vpow2.f32 %v1889_v28  ;;  %v1445_v42 = vand.u32 2147483648, %v2913_v14  ;;  %vm1545_vm11 = vweird.f32 %v2057_v10  ;;  %vm1411_vm14 = vmor %vm1409_vm6, %vm1410_vm10 }
 0x3a9   : > { %v1406_v6 = vsub.f32 1.0, %v1405_v12  ;;  %v2933_v41 = vadd.f32 1.0, %v2059_v61  ;;  %2066 = vrcp.f32 %v2930_v37  ;;  %vm1514_vm12 = vweird.f32 %v2910_v27  ;;  %vm1546_vm0 = vmor %vm1544_vm7, %vm1545_vm11 }
 0x3aa   : > { %v1541_v38 = vsub.f32 1.0, %v1540_v9  ;;  %2068 = vpow2.f32 %v1892_v32  ;;  %vm1439_vm13 = vweird.f32 %v2913_v14  ;;  %vm2945_vm15 = vcmp.eq.f32.partialorder %v1518_v3, 8.507059e+37 }
 0x3ab   : > { %v1407_v47 = vmul.f32 %v2055_v62, %v1406_v6  ;;  %2070 = vrcp.f32 %v2933_v41  ;;  %v1521_v25 = vor.u32 1.1754944e-38, %v1520_v21  ;;  %vm2953_vm1 = vcmp.eq.f32.partialorder %v1443_v20, 8.507059e+37 }
 0x3ac   : > { %v2061_v34 = vpop.eup %2060  ;;  %v1542_v39 = vmul.f32 %v2057_v10, %v1541_v38  ;;  %v1446_v36 = vor.u32 1.1754944e-38, %v1445_v42  ;;  %vm1589_vm3 = vweird.f32 %v2930_v37  ;;  %v1593_v56 = vand.u32 2147483647, %v2930_v37 }
 0x3ad   : > { %v2063_v44 = vpop.eup %2062  ;;  %v1408_v59 = vadd.f32 %v2055_v62, %v1407_v47  ;;  %v1510_v46 = vmul.f32 %v2061_v34, %v2910_v27  ;;  %vm1515_vm4 = vweird.f32 %v2061_v34  ;;  %v1595_v8 = vand.u32 2147483648, %v2930_v37 }
 0x3ae   : > { %v1543_v50 = vadd.f32 %v2057_v10, %v1542_v39  ;;  %v1435_v13 = vmul.f32 %v2063_v44, %v2913_v14  ;;  %v2065_v15 = vpop.eup %2064  ;;  %vm1440_vm5 = vweird.f32 %v2063_v44  ;;  %v1608_v11 = vand.u32 2147483647, %v2933_v41  ;;  %vm1516_vm6 = vmor %vm1514_vm12, %vm1515_vm4 }
 0x3af   : > { %v1412_v19 = vsel %vm1411_vm14, %v2055_v62, %v1408_v59  ;;  %v1511_v5 = vsub.f32 1.0, %v1510_v46  ;;  %v2067_v43 = vpop.eup %2066  ;;  %vm1441_vm7 = vmor %vm1439_vm13, %vm1440_vm5  ;;  %v1610_v14 = vand.u32 2147483648, %v2933_v41  ;;  %vm1594_vm11 = vcmp.eq.f32.partialorder %v1593_v56, 8.507059e+37 }
 0x3b0   : > { %v1417_v55 = vsel %vm2919_vm8, %v1416_v24, %v1412_v19  ;;  %v1547_v48 = vsel %vm1546_vm0, %v2057_v10, %v1543_v50  ;;  %v1436_v63 = vsub.f32 1.0, %v1435_v13  ;;  %v2069_v1 = vpop.eup %2068  ;;  %v1585_v53 = vmul.f32 %v2067_v43, %v2930_v37 }
 0x3b1   : > { %v1616_v29 = vadd.f32 1.0, %v1417_v55  ;;  %v1552_v57 = vsel %vm2925_vm9, %v1551_v31, %v1547_v48  ;;  %v1512_v26 = vmul.f32 %v2061_v34, %v1511_v5  ;;  %v2071_v35 = vpop.eup %2070  ;;  %vm1590_vm8 = vweird.f32 %v2067_v43 }
 0x3b2   : > { %v1625_v2 = vadd.f32 1.0, %v1552_v57  ;;  %v1437_v52 = vmul.f32 %v2063_v44, %v1436_v63  ;;  %v1586_v16 = vsub.f32 1.0, %v1585_v53  ;;  %v1600_v28 = vmul.f32 %v2071_v35, %v2933_v41  ;;  %vm1591_vm10 = vmor %vm1589_vm3, %vm1590_vm8 }
 0x3b3   : > { %v1632_v33 = vmul.f32 %v1616_v29, %v2638_v7  ;;  %v1513_v23 = vadd.f32 %v2061_v34, %v1512_v26  ;;  %v1368_v7 = vadd.f32 1.0, %v2065_v15  ;;  %v2975_v10 = vadd.f32 1.0, %v2069_v1 }
 0x3b4   : > { %v1641_v0 = vmul.f32 %v1625_v2, %v2602_v54  ;;  %v1438_v18 = vadd.f32 %v2063_v44, %v1437_v52  ;;  %v1587_v12 = vmul.f32 %v2067_v43, %v1586_v16  ;;  %v1601_v4 = vsub.f32 1.0, %v1600_v28 }
 0x3b5   : > { %1648 = vst.msk [vmem:[%s2368_s16 + $0x10] sm:$0xff] %vm1061_vm2, %v1632_v33  ;;  %v1517_v62 = vsel %vm1516_vm6, %v2061_v34, %v1513_v23  ;;  %2072 = vrcp.f32 %v1368_v7  ;;  %vm1605_vm9 = vweird.f32 %v2071_v35  ;;  %v1596_v6 = vor.u32 1.1754944e-38, %v1595_v8 }
 0x3b6   : > { %1657 = vst.msk [vmem:[%s2368_s16 + $0x58] sm:$0xff] %vm1061_vm2, %v1641_v0  ;;  %v1522_v54 = vsel %vm2945_vm15, %v1521_v25, %v1517_v62  ;;  %v1442_v27 = vsel %vm1441_vm7, %v2063_v44, %v1438_v18  ;;  %v1588_v31 = vadd.f32 %v2067_v43, %v1587_v12  ;;  %v1602_v32 = vmul.f32 %v2071_v35, %v1601_v4 }
 0x3b7   : > { %v1623_v24 = vadd.f32 1.0, %v1522_v54  ;;  %v1447_v9 = vsel %vm2953_vm1, %v1446_v36, %v1442_v27  ;;  %2074 = vrcp.f32 %v2975_v10  ;;  %vm1604_vm12 = vweird.f32 %v2933_v41 }
 0x3b8   : > { %v1618_v30 = vadd.f32 1.0, %v1447_v9  ;;  %v1592_v38 = vsel %vm1591_vm10, %v2067_v43, %v1588_v31  ;;  %v1603_v21 = vadd.f32 %v2071_v35, %v1602_v32  ;;  %vm1606_vm13 = vmor %vm1604_vm12, %vm1605_vm9  ;;  %vm1609_vm14 = vcmp.eq.f32.partialorder %v1608_v11, 8.507059e+37 }
 0x3b9   : > { %v1639_v61 = vmul.f32 %v1623_v24, %v2606_v58  ;;  %v1597_v47 = vsel %vm1594_vm11, %v1596_v6, %v1592_v38  ;;  %v1611_v58 = vor.u32 1.1754944e-38, %v1610_v14  ;;  %v1535_v51 = vand.u32 2147483648, %v1368_v7 }
 0x3ba   : > { %v1634_v3 = vmul.f32 %v1618_v30, %v2632_v22  ;;  %v1628_v37 = vadd.f32 1.0, %v1597_v47  ;;  %v1607_v20 = vsel %vm1606_vm13, %v2071_v35, %v1603_v21  ;;  %v1533_v13 = vand.u32 2147483647, %v1368_v7 }
 0x3bb   : > { %1655 = vst.msk [vmem:[%s2368_s16 + $0x48] sm:$0xff] %vm1061_vm2, %v1639_v61  ;;  %v2073_v42 = vpop.eup %2072  ;;  %v1612_v34 = vsel %vm1609_vm14, %v1611_v58, %v1607_v20  ;;  %vm1529_vm0 = vweird.f32 %v1368_v7  ;;  %v1578_v17 = vand.u32 2147483647, %v2975_v10  ;;  %vm1574_vm5 = vweird.f32 %v2975_v10 }
 0x3bc   : > { %1650 = vst.msk [vmem:[%s2368_s16 + $0x20] sm:$0xff] %vm1061_vm2, %v1634_v3  ;;  %v1644_v22 = vmul.f32 %v1628_v37, %v2590_v45  ;;  %v1629_v39 = vadd.f32 1.0, %v1612_v34  ;;  %v1525_v44 = vmul.f32 %v2073_v42, %v1368_v7  ;;  %vm1530_vm15 = vweird.f32 %v2073_v42 }
 0x3bd   : > { %v2075_v59 = vpop.eup %2074  ;;  %v1580_v45 = vand.u32 2147483648, %v2975_v10  ;;  %vm1531_vm3 = vmor %vm1529_vm0, %vm1530_vm15  ;;  %vm1534_vm4 = vcmp.eq.f32.partialorder %v1533_v13, 8.507059e+37  ;;  %vm1579_vm7 = vcmp.eq.f32.partialorder %v1578_v17, 8.507059e+37 }
 0x3be   : > { %1660 = vst.msk [vmem:[%s2368_s16 + $0x70] sm:$0xff] %vm1061_vm2, %v1644_v22  ;;  %v1645_v41 = vmul.f32 %v1629_v39, %v2586_v40  ;;  %v1526_v46 = vsub.f32 1.0, %v1525_v44  ;;  %v1570_v50 = vmul.f32 %v2075_v59, %v2975_v10  ;;  %vm1575_vm1 = vweird.f32 %v2075_v59 }
 0x3bf   : > { %v1536_v40 = vor.u32 1.1754944e-38, %v1535_v51  ;;  %vm1576_vm6 = vmor %vm1574_vm5, %vm1575_vm1  ;;  %v1581_v63 = vor.u32 1.1754944e-38, %v1580_v45 }
 0x3c0   : > { %1661 = vst.msk [vmem:[%s2368_s16 + $0x78] sm:$0xff] %vm1061_vm2, %v1645_v41  ;;  %v1527_v25 = vmul.f32 %v2073_v42, %v1526_v46  ;;  %v1571_v15 = vsub.f32 1.0, %v1570_v50 }
 0x3c2   : > { %v1528_v19 = vadd.f32 %v2073_v42, %v1527_v25  ;;  %v1572_v5 = vmul.f32 %v2075_v59, %v1571_v15 }
 0x3c4   : > { %v1532_v36 = vsel %vm1531_vm3, %v2073_v42, %v1528_v19  ;;  %v1573_v55 = vadd.f32 %v2075_v59, %v1572_v5 }
 0x3c5   : > { %v1537_v48 = vsel %vm1534_vm4, %v1536_v40, %v1532_v36 }
 0x3c6   : > { %v1624_v56 = vadd.f32 1.0, %v1537_v48  ;;  %v1577_v43 = vsel %vm1576_vm6, %v2075_v59, %v1573_v55 }
 0x3c7   : > { %v1582_v29 = vsel %vm1579_vm7, %v1581_v63, %v1577_v43 }
 0x3c8   : > { %v1640_v57 = vmul.f32 %v1624_v56, %v2608_v60  ;;  %v1627_v26 = vadd.f32 1.0, %v1582_v29 }
 0x3ca   : > { %1656 = vst.msk [vmem:[%s2368_s16 + $0x50] sm:$0xff] %vm1061_vm2, %v1640_v57  ;;  %v1643_v1 = vmul.f32 %v1627_v26, %v2596_v49 }
 0x3cc   : > { %1659 = vst.msk [vmem:[%s2368_s16 + $0x68] sm:$0xff] %vm1061_vm2, %v1643_v1 }
 0x3cd PF: > { %s23_s8 = sadd.s32 1, %s2206_s8   ;;  %s3078_s28 = sld [smem:[#allocation14_spill]] }
 0x3ce   : > { %p20_p3 = scmp.ge.s32.totalorder %s23_s8, 8   ;;  %s3079_s27 = sld [smem:[#allocation10_spill]] }
 0x3cf   : > { %s3080_s29 = sld [smem:[#allocation11_spill]]  ;;  %s3083_s24 = smov %s2182_s25 }
 0x3d0   : > { %s3081_s15 = sld [smem:[#allocation12_spill]]  ;;  %s3084_s25 = smov %s2186_s26 }
 0x3d1   : > { %s3082_s30 = sld [smem:[#allocation13_spill]] }
 0x3d2   :  { %22 = sbr.rel (!%p20_p3) target bundleno = 10 (0xa), region = 109 }
 0x3d3   : > { %s3085_s26 = smov %s3078_s28 }
 0x3d5   : > { %s3086_s28 = smov %s3080_s29 }
 0x3d6   : > { %s3087_s29 = smov %s3081_s15 }
 0x3d7   :  { %1683 = vsyncpa [#allocation5], 1 }
 0x3d8   :  { %1685 = vsyncpa [#allocation5 + $0x1], 1 }
 0x3d9   :  { %1686 = vsyncpa [#allocation7], 1 }
 0x3da   :  { %1688 = vsyncpa [#allocation7 + $0x1], 1 }

</bundles_post_ra>
